<compile_context>
chip_gen: v5e
topology: v5e:2x2
jax: 0.10.0
libtpu: 0.0.40
codegen_flags: <defaults>
</compile_context>

<pallas_src>
import jax
import jax.numpy as jnp
from jax import lax
from jax.experimental import pallas as pl
from jax.experimental.pallas import tpu as pltpu


# ----------------------------------------------------------------------------
# Tiling policy shared by the encoder parameter packing and the kernel.
# ----------------------------------------------------------------------------
def _enc_tiles(d):
    """Returns (tk, tn_feat): K tile width and per-column-tile feature width."""
    tn_feat = 512 if d % 512 == 0 else d
    if d % 1024 == 0:
        tk = 512          # d=4096: 8 K steps, 1 MiB bf16 W tiles
    elif d % 512 == 0:
        tk = 256          # d=512: keep >=2 K steps so DMA overlaps compute
    else:
        tk = d
    return tk, tn_feat


def _round_up(x, m):
    return -(-x // m) * m


# ----------------------------------------------------------------------------
# Kernel 1: fused (mu | softplus-sigma) head + KL(q || p).
#   grid = (column_tiles [parallel], K_tiles [arbitrary])
#   W is column-block packed: tile j = [wmu_block_j | wsig_block_j].
# ----------------------------------------------------------------------------
def _enc_kl_kernel(xp_ref, xq_ref, w_ref, b_ref,
                   pmu_ref, psig_ref, qmu_ref, qsig_ref, kl_ref,
                   accp_ref, accq_ref):
    k = pl.program_id(1)

    @pl.when(k == 0)
    def _():
        accp_ref[...] = jnp.zeros_like(accp_ref)
        accq_ref[...] = jnp.zeros_like(accq_ref)

    w = w_ref[...]                                           # [tk, 2*tn] bf16
    accp_ref[...] += jnp.dot(xp_ref[...], w, preferred_element_type=jnp.float32)
    accq_ref[...] += jnp.dot(xq_ref[...], w, preferred_element_type=jnp.float32)

    @pl.when(k == pl.num_programs(1) - 1)
    def _():
        tn = pmu_ref.shape[1]
        b = b_ref[...]                                       # [1, 2*tn] f32
        hp = accp_ref[...] + b                               # [N, 2*tn] f32
        hq = accq_ref[...] + b
        pmu = hp[:, :tn]
        qmu = hq[:, :tn]
        psig = jax.nn.softplus(hp[:, tn:]) + 1e-4            # strictly positive
        qsig = jax.nn.softplus(hq[:, tn:]) + 1e-4
        pmu_ref[...] = pmu.astype(pmu_ref.dtype)
        psig_ref[...] = psig.astype(psig_ref.dtype)
        qmu_ref[...] = qmu.astype(qmu_ref.dtype)
        qsig_ref[...] = qsig.astype(qsig_ref.dtype)
        # KL(N(qmu,qsig) || N(pmu,psig)) partial sum over this feature block.
        inv_psig = pl.reciprocal(psig, approx=True)
        ratio = qsig * inv_psig
        diff = (qmu - pmu) * inv_psig
        kl = 0.5 * (ratio * ratio + diff * diff - 1.0) - jnp.log(ratio)
        kl_ref[0] = jnp.broadcast_to(
            jnp.sum(kl, axis=-1, keepdims=True), kl_ref.shape[1:])


def fused_encoder_kl(x_prior, x_post, w_packed, b_packed):
    """x_prior/x_post: [N, d]. Returns (pmu, psig, qmu, qsig, kl_rows[N])."""
    n_rows, d = x_prior.shape
    tk, tn_feat = _enc_tiles(d)
    ncol = d // tn_feat
    nk = d // tk

    npad = _round_up(n_rows, 8)
    vmem_bytes = (
        4 * npad * tk * 2                 # x_prior + x_post, double-buffered, bf16
        + 2 * tk * 2 * tn_feat * 2        # W tile, double-buffered, bf16
        + 2 * 8 * 2 * tn_feat * 4         # bias tile, double-buffered, f32
        + 4 * 2 * npad * tn_feat * 2      # 4 bf16 output tiles, double-buffered
        + 2 * npad * 128 * 4              # KL partial tile
        + 2 * npad * 2 * tn_feat * 4      # f32 accumulators (scratch)
        + (4 << 20)                       # headroom
    )
    vmem_limit = int(max(16 << 20, min(vmem_bytes, 64 << 20)))

    xp = x_prior.astype(jnp.bfloat16)
    xq = x_post.astype(jnp.bfloat16)

    pmu, psig, qmu, qsig, kl_part = pl.pallas_call(
        _enc_kl_kernel,
        out_shape=(
            jax.ShapeDtypeStruct((n_rows, d), jnp.bfloat16),
            jax.ShapeDtypeStruct((n_rows, d), jnp.bfloat16),
            jax.ShapeDtypeStruct((n_rows, d), jnp.bfloat16),
            jax.ShapeDtypeStruct((n_rows, d), jnp.bfloat16),
            jax.ShapeDtypeStruct((ncol, n_rows, 128), jnp.float32),
        ),
        grid=(ncol, nk),
        in_specs=[
            pl.BlockSpec((n_rows, tk), lambda j, k: (0, k)),            # x_prior
            pl.BlockSpec((n_rows, tk), lambda j, k: (0, k)),            # x_post
            pl.BlockSpec((tk, 2 * tn_feat), lambda j, k: (k, j)),       # W packed
            pl.BlockSpec((1, 2 * tn_feat), lambda j, k: (0, j)),        # bias packed
        ],
        out_specs=(
            pl.BlockSpec((n_rows, tn_feat), lambda j, k: (0, j)),       # pmu
            pl.BlockSpec((n_rows, tn_feat), lambda j, k: (0, j)),       # psig
            pl.BlockSpec((n_rows, tn_feat), lambda j, k: (0, j)),       # qmu
            pl.BlockSpec((n_rows, tn_feat), lambda j, k: (0, j)),       # qsig
            pl.BlockSpec((1, n_rows, 128), lambda j, k: (j, 0, 0)),     # KL partial
        ),
        scratch_shapes=[pltpu.VMEM((n_rows, 2 * tn_feat), jnp.float32),
                        pltpu.VMEM((n_rows, 2 * tn_feat), jnp.float32)],
        compiler_params=pltpu.CompilerParams(
            dimension_semantics=("parallel", "arbitrary"),
            vmem_limit_bytes=vmem_limit),
    )(xp, xq, w_packed, b_packed)

    kl_rows = jnp.sum(kl_part[:, :, 0], axis=0)              # sum over column tiles
    return pmu, psig, qmu, qsig, kl_rows


# ----------------------------------------------------------------------------
# Kernel 2: per-task logits.  A [T, n, d] x C [T, cols_pad, d] (contraction on
# the last axis of BOTH operands -> classifier stays lane-dense, no wrapper
# transpose), cols_pad is a multiple of 128 (unmasked lane-dense stores).
# ----------------------------------------------------------------------------
def _task_logits_kernel(a_ref, c_ref, o_ref):
    o_ref[0] = lax.dot_general(
        a_ref[0], c_ref[0],
        dimension_numbers=(((1,), (1,)), ((), ())),
        preferred_element_type=jnp.float32)


def task_batched_matmul(a, c):
    """a: [T, n, d], c: [T, cols_pad, d] -> [T, n, cols_pad] float32."""
    t_dim, n, d = a.shape
    w_cols = c.shape[1]
    npad = _round_up(n, 8)
    vmem_bytes = 2 * (npad * d * 2 + w_cols * d * 2 + npad * w_cols * 4) + (2 << 20)
    vmem_limit = int(max(16 << 20, min(vmem_bytes, 64 << 20)))
    return pl.pallas_call(
        _task_logits_kernel,
        out_shape=jax.ShapeDtypeStruct((t_dim, n, w_cols), jnp.float32),
        grid=(t_dim,),
        in_specs=[pl.BlockSpec((1, n, d), lambda t: (t, 0, 0)),
                  pl.BlockSpec((1, w_cols, d), lambda t: (t, 0, 0))],
        out_specs=pl.BlockSpec((1, n, w_cols), lambda t: (t, 0, 0)),
        compiler_params=pltpu.CompilerParams(
            dimension_semantics=("parallel",),
            vmem_limit_bytes=vmem_limit),
    )(a.astype(jnp.bfloat16), c.astype(jnp.bfloat16))


# ----------------------------------------------------------------------------
# Synthesized probabilistic encoder parameters (column-block packed, bf16).
# TODO(synk): original basic_model.ProbabilisticEncoder_{theta,phi} are
# transformer-style set encoders; approximated as mean-pool + linear heads.
# ----------------------------------------------------------------------------
class FusedProbabilisticEncoder:
    def __init__(self, key, d_feature):
        k1, k2 = jax.random.split(key)
        scale = 1.0 / jnp.sqrt(d_feature)
        wmu = jax.random.normal(k1, (d_feature, d_feature), jnp.float32) * scale
        wsig = jax.random.normal(k2, (d_feature, d_feature), jnp.float32) * scale
        _, tn_feat = _enc_tiles(d_feature)
        ncol = d_feature // tn_feat
        # Column-block pack: tile j = [wmu_block_j | wsig_block_j].
        wmu_b = wmu.reshape(d_feature, ncol, tn_feat)
        wsig_b = wsig.reshape(d_feature, ncol, tn_feat)
        self.w = jnp.concatenate([wmu_b, wsig_b], axis=2).reshape(
            d_feature, 2 * d_feature).astype(jnp.bfloat16)
        self.b = jnp.zeros((1, 2 * d_feature), jnp.float32)   # packed layout (zeros)
        self.d = d_feature


# ----------------------------------------------------------------------------
# HNP forward pass
# ----------------------------------------------------------------------------
class HNP:
    def __init__(self, config, key):
        self.dataset = config['dset_name']
        self.num_task = config['num_task']
        self.way_number = config['way_number']
        self.shot_number = config['shot_number']
        self.w_repeat = config['w_repeat']
        self.z_repeat = config['z_repeat']
        self.x_feature = 512 if self.dataset == 'domainnet' else 4096
        self.d_feature = self.x_feature
        config['d_feature'] = self.d_feature
        self.a_z = self.z_repeat  # TODO(synk): `self.a_z` is undefined in the reference module
        self.training = True
        k1, k2 = jax.random.split(key)
        self.task_probabilistic_encoder = FusedProbabilisticEncoder(k1, self.d_feature)
        self.class_probabilistic_encoder = FusedProbabilisticEncoder(k2, self.d_feature)

    # -- task level -----------------------------------------------------------
    def task_wise_transformer_inference(self, x_c_order, x_t_order, key):
        d = self.d_feature
        T = self.num_task
        task_prior = x_c_order.reshape(T, -1, d)
        task_posterior = x_t_order.reshape(T, -1, d)
        pooled_prior = jnp.mean(task_prior, axis=1)           # [T, d]
        pooled_post = jnp.mean(task_posterior, axis=1)        # [T, d]

        enc = self.task_probabilistic_encoder
        z_pmu, z_psigma, z_qmu, z_qsigma, kl_z = fused_encoder_kl(
            pooled_prior, pooled_post, enc.w, enc.b)

        kp, kq = jax.random.split(key)
        eps_p = jax.random.normal(kp, (self.a_z, T, d), jnp.float32)
        z_psample = z_pmu[None].astype(jnp.float32) + z_psigma[None] * eps_p  # [z, T, d]
        eps_q = jax.random.normal(kq, (self.z_repeat, T, d), jnp.float32)
        z_qsample = z_qmu[None].astype(jnp.float32) + z_qsigma[None] * eps_q  # [z, T, d]
        return kl_z, z_psample, z_qsample

    # -- class level (batched over tasks) -------------------------------------
    def class_wise_transformer_inference(self, a_qsample, a_psample,
                                         x_c_order, x_t_order, x_t, key):
        d = self.d_feature
        T, way = self.num_task, self.way_number
        z, w = self.z_repeat, self.w_repeat
        B = z * w

        te_all = jnp.swapaxes(a_qsample if self.training else a_psample, 0, 1)  # [T, z, d]
        pooled_c = jnp.mean(x_c_order, axis=(0, 2))           # [way, d]
        pooled_t = jnp.mean(x_t_order, axis=(0, 2))           # [way, d]
        h_prior = pooled_c[None, None] + te_all[:, :, None]   # [T, z, way, d]
        h_post = pooled_t[None, None] + te_all[:, :, None]    # [T, z, way, d]

        n_rows = T * z * way
        enc = self.class_probabilistic_encoder
        phi_pmu, phi_psigma, phi_qmu, phi_qsigma, kl_rows = fused_encoder_kl(
            h_prior.reshape(n_rows, d), h_post.reshape(n_rows, d), enc.w, enc.b)

        # kl.mean(dim=0).sum() per task  ==  sum over (z, way, d) / z
        kl_w = kl_rows.reshape(T, z, way).sum(axis=(1, 2)) / z

        shape4 = (T, z, way, d)
        phi_pmu = phi_pmu.reshape(shape4)
        phi_psigma = phi_psigma.reshape(shape4)
        phi_qmu = phi_qmu.reshape(shape4)
        phi_qsigma = phi_qsigma.reshape(shape4)

        kq, kp = jax.random.split(key)
        if self.training:
            # eps drawn directly in [T, z, w, way, d] order (iid; matches the
            # reference's rsample([w]).transpose(0,1) layout without a swapaxes).
            eps_q = jax.random.normal(kq, (T, z, w, way, d), jnp.float32)
            phi_qs = phi_qmu[:, :, None] + phi_qsigma[:, :, None] * eps_q
            eps_p = jax.random.normal(kp, (T, z, w, way, d), jnp.float32)
            phi_ps = phi_pmu[:, :, None] + phi_psigma[:, :, None] * eps_p
        else:
            phi_qs = jnp.broadcast_to(
                phi_qmu[:, :, None].astype(jnp.float32), (T, z, w, way, d))
            phi_ps = jnp.broadcast_to(
                phi_pmu[:, :, None].astype(jnp.float32), (T, z, w, way, d))

        # torch per-task reshape([z,w,way,d] -> [way, z*w, d]); classifier row
        # for output column (c, b) is that flat row c*B + b -> a PURE reshape
        # keeps d on the lane axis (no transpose needed).
        BW = B * way
        Cq = phi_qs.reshape(T, BW, d).astype(jnp.bfloat16)    # posterior classifier rows
        Cp = phi_ps.reshape(T, BW, d).astype(jnp.bfloat16)    # prior classifier rows
        ncols = 2 * BW
        ncols_pad = _round_up(ncols, 128)
        parts = [Cq, Cp]
        if ncols_pad > ncols:
            parts.append(jnp.zeros((T, ncols_pad - ncols, d), jnp.bfloat16))
        C_all = jnp.concatenate(parts, axis=1)                # [T, ncols_pad, d]

        A = x_t.reshape(T, -1, d)                             # [T, n, d]
        out_all = task_batched_matmul(A, C_all)               # [T, n, ncols_pad]
        n = A.shape[1]
        out_post = out_all[:, :, :BW].reshape(T, n, way, B).transpose(0, 3, 1, 2)
        out_prior = out_all[:, :, BW:ncols].reshape(T, n, way, B).transpose(0, 3, 1, 2)
        return kl_w, out_post, out_prior

    # -- forward ---------------------------------------------------------------
    def __call__(self, inputs_batch, labels_batch, key):
        label_all = jnp.squeeze(labels_batch, -1)             # [T, way, S]
        indices = jnp.argsort(label_all[0, :, 0])
        x_c = inputs_batch[:, :, :self.shot_number, :]
        x_t = inputs_batch[:, :, self.shot_number:, :]
        x_c_order = x_c[:, indices, :, :]
        x_t_order = x_t[:, indices, :, :]
        k1, k2 = jax.random.split(key)
        kl_z, z_psample, z_qsample = self.task_wise_transformer_inference(
            x_c_order, x_t_order, k1)
        kl_w, out_post, out_prior = self.class_wise_transformer_inference(
            z_qsample, z_psample, x_c_order, x_t_order, x_t, k2)
        if self.training:
            return out_post, out_prior, kl_z, kl_w
        return out_prior


# ----------------------------------------------------------------------------
if __name__ == "__main__":
    config = {
        'dset_name': 'domainnet',   # -> d_feature = 512
        'num_task': 2,
        'way_number': 4,
        'shot_number': 2,
        'w_repeat': 2,
        'z_repeat': 2,
    }
    key = jax.random.PRNGKey(0)
    k_model, k_in, k_fwd = jax.random.split(key, 3)

    model = HNP(config, k_model)

    T, W = config['num_task'], config['way_number']
    S_total = 4                      # shot (2) + query (2) per class
    D = model.d_feature
    inputs_batch = jax.random.normal(k_in, (T, W, S_total, D), jnp.float32)
    # class labels per way (reversed so the sort actually reorders)
    labels = jnp.arange(W - 1, -1, -1, dtype=jnp.int32)
    labels_batch = jnp.broadcast_to(labels[None, :, None, None], (T, W, S_total, 1))

    out_post, out_prior, kl_z, kl_w = model(inputs_batch, labels_batch, k_fwd)
    jax.block_until_ready((out_post, out_prior, kl_z, kl_w))

    B = config['w_repeat'] * config['z_repeat']
    n_query = W * (S_total - config['shot_number'])
    assert out_post.shape == (T, B, n_query, W)
    assert out_prior.shape == out_post.shape
    assert kl_z.shape == (T,)
    assert kl_w.shape == (T,)
    assert bool(jnp.all(jnp.isfinite(out_post)))
    assert bool(jnp.all(jnp.isfinite(out_prior)))
    assert bool(jnp.all(jnp.isfinite(kl_z))) and bool(jnp.all(jnp.isfinite(kl_w)))
    print("KERNEL_OK")
</pallas_src>

<mosaic_0001>
module attributes {stable_mosaic.version = 11 : i64} {
  func.func @_enc_kl_kernel(%arg0: i32, %arg1: i32, %arg2: memref<2x256xbf16, #tpu.memory_space<vmem>>, %arg3: memref<2x256xbf16, #tpu.memory_space<vmem>>, %arg4: memref<256x1024xbf16, #tpu.memory_space<vmem>>, %arg5: memref<1x1024xf32, #tpu.memory_space<vmem>>, %arg6: memref<2x512xbf16, #tpu.memory_space<vmem>>, %arg7: memref<2x512xbf16, #tpu.memory_space<vmem>>, %arg8: memref<2x512xbf16, #tpu.memory_space<vmem>>, %arg9: memref<2x512xbf16, #tpu.memory_space<vmem>>, %arg10: memref<1x2x128xf32, #tpu.memory_space<vmem>>, %arg11: memref<2x1024xf32, #tpu.memory_space<vmem>>, %arg12: memref<2x1024xf32, #tpu.memory_space<vmem>>) attributes {dimension_semantics = [#tpu.dimension_semantics<parallel>, #tpu.dimension_semantics<arbitrary>], iteration_bounds = array<i64: 1, 2>, scalar_prefetch = 0 : i64, scratch_operands = 2 : i64, tpu.core_type = #tpu.core_type<tc>, window_params = [{transform_indices = @transform_0, window_bounds = array<i64: 2, 256>}, {transform_indices = @transform_1, window_bounds = array<i64: 2, 256>}, {transform_indices = @transform_2, window_bounds = array<i64: 256, 1024>}, {transform_indices = @transform_3, window_bounds = array<i64: 1, 1024>}, {transform_indices = @transform_4, window_bounds = array<i64: 2, 512>}, {transform_indices = @transform_5, window_bounds = array<i64: 2, 512>}, {transform_indices = @transform_6, window_bounds = array<i64: 2, 512>}, {transform_indices = @transform_7, window_bounds = array<i64: 2, 512>}, {transform_indices = @transform_8, window_bounds = array<i64: 1, 2, 128>}]} {
    %c0_i32 = arith.constant 0 : i32
    %0 = arith.cmpi eq, %arg1, %c0_i32 : i32
    %1 = arith.extui %0 : i1 to i32
    %c0_i32_0 = arith.constant 0 : i32
    %2 = arith.cmpi ne, %1, %c0_i32_0 : i32
    scf.if %2 {
      %cst_16 = arith.constant 0.000000e+00 : f32
      %17 = vector.broadcast %cst_16 : f32 to vector<2x1024xf32>
      %c0_17 = arith.constant 0 : index
      %c0_18 = arith.constant 0 : index
      %18 = vector.load %arg11[%c0_17, %c0_18] : memref<2x1024xf32, #tpu.memory_space<vmem>>, vector<2x1024xf32>
      tpu.vector_store %arg11[%c0_17, %c0_18], %17 {strides = array<i32>} : memref<2x1024xf32, #tpu.memory_space<vmem>>, vector<2x1024xf32>,
      %cst_19 = arith.constant 0.000000e+00 : f32
      %19 = vector.broadcast %cst_19 : f32 to vector<2x1024xf32>
      %c0_20 = arith.constant 0 : index
      %c0_21 = arith.constant 0 : index
      %20 = vector.load %arg12[%c0_20, %c0_21] : memref<2x1024xf32, #tpu.memory_space<vmem>>, vector<2x1024xf32>
      tpu.vector_store %arg12[%c0_20, %c0_21], %19 {strides = array<i32>} : memref<2x1024xf32, #tpu.memory_space<vmem>>, vector<2x1024xf32>,
    } else {
    }
    %c0 = arith.constant 0 : index
    %c0_1 = arith.constant 0 : index
    %3 = vector.load %arg4[%c0, %c0_1] : memref<256x1024xbf16, #tpu.memory_space<vmem>>, vector<256x1024xbf16>
    %c0_2 = arith.constant 0 : index
    %c0_3 = arith.constant 0 : index
    %4 = vector.load %arg11[%c0_2, %c0_3] : memref<2x1024xf32, #tpu.memory_space<vmem>>, vector<2x1024xf32>
    %c0_4 = arith.constant 0 : index
    %c0_5 = arith.constant 0 : index
    %5 = vector.load %arg2[%c0_4, %c0_5] : memref<2x256xbf16, #tpu.memory_space<vmem>>, vector<2x256xbf16>
    %cst = arith.constant dense<0.000000e+00> : vector<2x1024xf32>
    %6 = tpu.matmul %5, %3, %cst {dimension_numbers = #tpu.dot_dimension_numbers<[1], [0], [0], [1], [0, 0, 1, 1], [], []>} : vector<2x256xbf16>, vector<256x1024xbf16>, vector<2x1024xf32> -> vector<2x1024xf32>
    %7 = arith.addf %4, %6 : vector<2x1024xf32>
    %c0_6 = arith.constant 0 : index
    %c0_7 = arith.constant 0 : index
    %8 = vector.load %arg11[%c0_6, %c0_7] : memref<2x1024xf32, #tpu.memory_space<vmem>>, vector<2x1024xf32>
    tpu.vector_store %arg11[%c0_6, %c0_7], %7 {strides = array<i32>} : memref<2x1024xf32, #tpu.memory_space<vmem>>, vector<2x1024xf32>,
    %c0_8 = arith.constant 0 : index
    %c0_9 = arith.constant 0 : index
    %9 = vector.load %arg12[%c0_8, %c0_9] : memref<2x1024xf32, #tpu.memory_space<vmem>>, vector<2x1024xf32>
    %c0_10 = arith.constant 0 : index
    %c0_11 = arith.constant 0 : index
    %10 = vector.load %arg3[%c0_10, %c0_11] : memref<2x256xbf16, #tpu.memory_space<vmem>>, vector<2x256xbf16>
    %cst_12 = arith.constant dense<0.000000e+00> : vector<2x1024xf32>
    %11 = tpu.matmul %10, %3, %cst_12 {dimension_numbers = #tpu.dot_dimension_numbers<[1], [0], [0], [1], [0, 0, 1, 1], [], []>} : vector<2x256xbf16>, vector<256x1024xbf16>, vector<2x1024xf32> -> vector<2x1024xf32>
    %12 = arith.addf %9, %11 : vector<2x1024xf32>
    %c0_13 = arith.constant 0 : index
    %c0_14 = arith.constant 0 : index
    %13 = vector.load %arg12[%c0_13, %c0_14] : memref<2x1024xf32, #tpu.memory_space<vmem>>, vector<2x1024xf32>
    tpu.vector_store %arg12[%c0_13, %c0_14], %12 {strides = array<i32>} : memref<2x1024xf32, #tpu.memory_space<vmem>>, vector<2x1024xf32>,
    %c1_i32 = arith.constant 1 : i32
    %14 = arith.cmpi eq, %arg1, %c1_i32 : i32
    %15 = arith.extui %14 : i1 to i32
    %c0_i32_15 = arith.constant 0 : i32
    %16 = arith.cmpi ne, %15, %c0_i32_15 : i32
    scf.if %16 {
      %c0_16 = arith.constant 0 : index
      %c0_17 = arith.constant 0 : index
      %17 = vector.load %arg5[%c0_16, %c0_17] : memref<1x1024xf32, #tpu.memory_space<vmem>>, vector<1x1024xf32>
      %c0_18 = arith.constant 0 : index
      %c0_19 = arith.constant 0 : index
      %18 = vector.load %arg11[%c0_18, %c0_19] : memref<2x1024xf32, #tpu.memory_space<vmem>>, vector<2x1024xf32>
      %19 = vector.broadcast %17 : vector<1x1024xf32> to vector<2x1024xf32>
      %20 = arith.addf %18, %19 : vector<2x1024xf32>
      %c0_20 = arith.constant 0 : index
      %c0_21 = arith.constant 0 : index
      %21 = vector.load %arg12[%c0_20, %c0_21] : memref<2x1024xf32, #tpu.memory_space<vmem>>, vector<2x1024xf32>
      %22 = vector.broadcast %17 : vector<1x1024xf32> to vector<2x1024xf32>
      %23 = arith.addf %21, %22 : vector<2x1024xf32>
      %24 = vector.extract_strided_slice %20 {offsets = [0, 0], sizes = [2, 512], strides = [1, 1]} : vector<2x1024xf32> to vector<2x512xf32>
      %25 = vector.extract_strided_slice %23 {offsets = [0, 0], sizes = [2, 512], strides = [1, 1]} : vector<2x1024xf32> to vector<2x512xf32>
      %26 = vector.extract_strided_slice %20 {offsets = [0, 512], sizes = [2, 512], strides = [1, 1]} : vector<2x1024xf32> to vector<2x512xf32>
      %cst_22 = arith.constant 0.000000e+00 : f32
      %27 = vector.broadcast %cst_22 : f32 to vector<2x512xf32>
      %28 = arith.maximumf %26, %27 : vector<2x512xf32>
      %29 = vector.broadcast %cst_22 : f32 to vector<2x512xf32>
      %30 = arith.subf %26, %29 : vector<2x512xf32>
      %31 = arith.cmpf one, %30, %30 : vector<2x512xf32>
      %32 = vector.broadcast %cst_22 : f32 to vector<2x512xf32>
      %33 = arith.addf %26, %32 : vector<2x512xf32>
      %34 = math.absf %30 : vector<2x512xf32>
      %cst_23 = arith.constant 0.000000e+00 : f32
      %35 = vector.broadcast %cst_23 : f32 to vector<2x512xf32>
      %36 = arith.subf %35, %34 : vector<2x512xf32>
      %37 = math.exp %36 : vector<2x512xf32>
      %38 = math.log1p %37 : vector<2x512xf32>
      %39 = arith.addf %28, %38 : vector<2x512xf32>
      %40 = arith.select %31, %33, %39 : vector<2x512xi1>, vector<2x512xf32>
      %cst_24 = arith.constant 9.99999974E-5 : f32
      %41 = vector.broadcast %cst_24 : f32 to vector<2x512xf32>
      %42 = arith.addf %40, %41 : vector<2x512xf32>
      %43 = vector.extract_strided_slice %23 {offsets = [0, 512], sizes = [2, 512], strides = [1, 1]} : vector<2x1024xf32> to vector<2x512xf32>
      %cst_25 = arith.constant 0.000000e+00 : f32
      %44 = vector.broadcast %cst_25 : f32 to vector<2x512xf32>
      %45 = arith.maximumf %43, %44 : vector<2x512xf32>
      %46 = vector.broadcast %cst_25 : f32 to vector<2x512xf32>
      %47 = arith.subf %43, %46 : vector<2x512xf32>
      %48 = arith.cmpf one, %47, %47 : vector<2x512xf32>
      %49 = vector.broadcast %cst_25 : f32 to vector<2x512xf32>
      %50 = arith.addf %43, %49 : vector<2x512xf32>
      %51 = math.absf %47 : vector<2x512xf32>
      %cst_26 = arith.constant 0.000000e+00 : f32
      %52 = vector.broadcast %cst_26 : f32 to vector<2x512xf32>
      %53 = arith.subf %52, %51 : vector<2x512xf32>
      %54 = math.exp %53 : vector<2x512xf32>
      %55 = math.log1p %54 : vector<2x512xf32>
      %56 = arith.addf %45, %55 : vector<2x512xf32>
      %57 = arith.select %48, %50, %56 : vector<2x512xi1>, vector<2x512xf32>
      %cst_27 = arith.constant 9.99999974E-5 : f32
      %58 = vector.broadcast %cst_27 : f32 to vector<2x512xf32>
      %59 = arith.addf %57, %58 : vector<2x512xf32>
      %60 = arith.truncf %24 : vector<2x512xf32> to vector<2x512xbf16>
      %c0_28 = arith.constant 0 : index
      %c0_29 = arith.constant 0 : index
      %61 = vector.load %arg6[%c0_28, %c0_29] : memref<2x512xbf16, #tpu.memory_space<vmem>>, vector<2x512xbf16>
      tpu.vector_store %arg6[%c0_28, %c0_29], %60 {strides = array<i32>} : memref<2x512xbf16, #tpu.memory_space<vmem>>, vector<2x512xbf16>,
      %62 = arith.truncf %42 : vector<2x512xf32> to vector<2x512xbf16>
      %c0_30 = arith.constant 0 : index
      %c0_31 = arith.constant 0 : index
      %63 = vector.load %arg7[%c0_30, %c0_31] : memref<2x512xbf16, #tpu.memory_space<vmem>>, vector<2x512xbf16>
      tpu.vector_store %arg7[%c0_30, %c0_31], %62 {strides = array<i32>} : memref<2x512xbf16, #tpu.memory_space<vmem>>, vector<2x512xbf16>,
      %64 = arith.truncf %25 : vector<2x512xf32> to vector<2x512xbf16>
      %c0_32 = arith.constant 0 : index
      %c0_33 = arith.constant 0 : index
      %65 = vector.load %arg8[%c0_32, %c0_33] : memref<2x512xbf16, #tpu.memory_space<vmem>>, vector<2x512xbf16>
      tpu.vector_store %arg8[%c0_32, %c0_33], %64 {strides = array<i32>} : memref<2x512xbf16, #tpu.memory_space<vmem>>, vector<2x512xbf16>,
      %66 = arith.truncf %59 : vector<2x512xf32> to vector<2x512xbf16>
      %c0_34 = arith.constant 0 : index
      %c0_35 = arith.constant 0 : index
      %67 = vector.load %arg9[%c0_34, %c0_35] : memref<2x512xbf16, #tpu.memory_space<vmem>>, vector<2x512xbf16>
      tpu.vector_store %arg9[%c0_34, %c0_35], %66 {strides = array<i32>} : memref<2x512xbf16, #tpu.memory_space<vmem>>, vector<2x512xbf16>,
      %68 = tpu.reciprocal %42 {approx = true} : vector<2x512xf32> -> vector<2x512xf32>
      %69 = arith.mulf %59, %68 : vector<2x512xf32>
      %70 = arith.subf %25, %24 : vector<2x512xf32>
      %71 = arith.mulf %70, %68 : vector<2x512xf32>
      %72 = arith.mulf %69, %69 : vector<2x512xf32>
      %73 = arith.mulf %71, %71 : vector<2x512xf32>
      %74 = arith.addf %72, %73 : vector<2x512xf32>
      %cst_36 = arith.constant 1.000000e+00 : f32
      %75 = vector.broadcast %cst_36 : f32 to vector<2x512xf32>
      %76 = arith.subf %74, %75 : vector<2x512xf32>
      %cst_37 = arith.constant 5.000000e-01 : f32
      %77 = vector.broadcast %cst_37 : f32 to vector<2x512xf32>
      %78 = arith.mulf %77, %76 : vector<2x512xf32>
      %79 = math.log %69 : vector<2x512xf32>
      %80 = arith.subf %78, %79 : vector<2x512xf32>
      %cst_38 = arith.constant dense<0.000000e+00> : vector<2xf32>
      %81 = vector.multi_reduction <add>, %80, %cst_38 [1] : vector<2x512xf32> to vector<2xf32>
      %82 = vector.shape_cast %81 : vector<2xf32> to vector<2x1xf32>
      %83 = vector.shape_cast %82 : vector<2x1xf32> to vector<2x1xf32>
      %84 = vector.broadcast %83 : vector<2x1xf32> to vector<2x128xf32>
      %c0_39 = arith.constant 0 : index
      %c0_40 = arith.constant 0 : index
      %c0_41 = arith.constant 0 : index
      %85 = vector.load %arg10[%c0_39, %c0_40, %c0_41] : memref<1x2x128xf32, #tpu.memory_space<vmem>>, vector<1x2x128xf32>
      %86 = vector.shape_cast %85 : vector<1x2x128xf32> to vector<2x128xf32>
      %87 = vector.shape_cast %84 : vector<2x128xf32> to vector<1x2x128xf32>
      tpu.vector_store %arg10[%c0_39, %c0_40, %c0_41], %87 {strides = array<i32>} : memref<1x2x128xf32, #tpu.memory_space<vmem>>, vector<1x2x128xf32>,
    } else {
    }
    return
  }
  func.func @transform_0(%arg0: i32, %arg1: i32) -> (i32, i32) {
    %c0_i32 = arith.constant 0 : i32
    %c0_i32_0 = arith.constant 0 : i32
    return %c0_i32, %arg1 : i32, i32
  }
  func.func @transform_1(%arg0: i32, %arg1: i32) -> (i32, i32) {
    %c0_i32 = arith.constant 0 : i32
    %c0_i32_0 = arith.constant 0 : i32
    return %c0_i32, %arg1 : i32, i32
  }
  func.func @transform_2(%arg0: i32, %arg1: i32) -> (i32, i32) {
    %c0_i32 = arith.constant 0 : i32
    return %arg1, %arg0 : i32, i32
  }
  func.func @transform_3(%arg0: i32, %arg1: i32) -> (i32, i32) {
    %c0_i32 = arith.constant 0 : i32
    %c0_i32_0 = arith.constant 0 : i32
    return %c0_i32, %arg0 : i32, i32
  }
  func.func @transform_4(%arg0: i32, %arg1: i32) -> (i32, i32) {
    %c0_i32 = arith.constant 0 : i32
    %c0_i32_0 = arith.constant 0 : i32
    return %c0_i32, %arg0 : i32, i32
  }
  func.func @transform_5(%arg0: i32, %arg1: i32) -> (i32, i32) {
    %c0_i32 = arith.constant 0 : i32
    %c0_i32_0 = arith.constant 0 : i32
    return %c0_i32, %arg0 : i32, i32
  }
  func.func @transform_6(%arg0: i32, %arg1: i32) -> (i32, i32) {
    %c0_i32 = arith.constant 0 : i32
    %c0_i32_0 = arith.constant 0 : i32
    return %c0_i32, %arg0 : i32, i32
  }
  func.func @transform_7(%arg0: i32, %arg1: i32) -> (i32, i32) {
    %c0_i32 = arith.constant 0 : i32
    %c0_i32_0 = arith.constant 0 : i32
    return %c0_i32, %arg0 : i32, i32
  }
  func.func @transform_8(%arg0: i32, %arg1: i32) -> (i32, i32, i32) {
    %c0_i32 = arith.constant 0 : i32
    %c0_i32_0 = arith.constant 0 : i32
    %c0_i32_1 = arith.constant 0 : i32
    return %arg0, %c0_i32, %c0_i32_0 : i32, i32, i32
  }
}

</mosaic_0001>

<bundles_post_ra>
// kernel: tpu_custom_call.1
= control target key start
LH: loop header
LB: loop body
LE: loop exit
PB: predicated region body
PF: predicated region fallthrough
CT: control target
= control target key end

     0   :  { %s4399_s0 = inlined_call_operand.hbm [shape: bf16[2,512], index: 0, kind: input, shape index: {}]   ;;  %s4400_s1 = inlined_call_operand.hbm [shape: bf16[2,512], index: 1, kind: input, shape index: {}]   ;;  %s4401_s2 = inlined_call_operand.hbm [shape: bf16[512,1024], index: 2, kind: input, shape index: {}]   ;;  %s4402_s3 = inlined_call_operand.hbm [shape: f32[1,1024], index: 3, kind: input, shape index: {}]   ;;  %s4403_s4 = inlined_call_operand.hbm [shape: bf16[2,512], index: 4, kind: output, shape index: {0}]   ;;  %s4404_s5 = inlined_call_operand.hbm [shape: bf16[2,512], index: 5, kind: output, shape index: {1}]   ;;  %s4405_s6 = inlined_call_operand.hbm [shape: bf16[2,512], index: 6, kind: output, shape index: {2}]   ;;  %s4406_s7 = inlined_call_operand.hbm [shape: bf16[2,512], index: 7, kind: output, shape index: {3}]   ;;  %s4407_s8 = inlined_call_operand.hbm [shape: f32[1,2,128], index: 8, kind: output, shape index: {4}]  }
   0x1   :  { %4488 = sst [smem:[#allocation106_spill]] %s4400_s1 }
   0x2   :  { %4489 = sst [smem:[#allocation107_spill]] %s4402_s3 }
   0x3   :  { %4490 = sst [smem:[#allocation108_spill]] %s4405_s6 }
   0x4   :  { %4491 = sst [smem:[#allocation109_spill]] %s4407_s8 }
   0x5   :  { %14 = vsyncpa [#allocation5], 0 }
   0x6   :  { %16 = vsyncpa [#allocation5 + $0x1], 0 }
   0x7   :  { %17 = vsyncpa [#allocation8], 0 }
   0x8   :  { %19 = vsyncpa [#allocation8 + $0x1], 0 }
   0x9   :  { %20 = vsyncpa [#allocation11], 0 }
   0xa   :  { %21 = vsyncpa [#allocation6], 0 }
   0xb   :  { %22 = vsyncpa [#allocation14], 0 }
   0xc   :  { %23 = vsyncpa [#allocation17], 0  ;;  %s3356_s27 = smov 0   ;;  %s3358_s28 = smov 0  }
   0xd   :  { %s3360_s29 = smov 0   ;;  %s3362_s30 = smov 0  }
   0xe   :  { %s3364_s9 = smov 0   ;;  %s3366_s10 = smov 0  }
   0xf LB: > { %4492 = sst [smem:[#allocation25_spill]] %s3288_s29  ;;  %s38_s11 = sadd.s32 1, %s3296_s9  ;;  %s3300_s10 = sphi %s3366_s10, %s29_s10   ;;  %s3296_s9 = sphi %s3364_s9, %s4664_s9   ;;  %s3292_s30 = sphi %s3362_s30, %s4663_s30   ;;  %s3288_s29 = sphi %s3360_s29, %s4659_s29   ;;  %s3284_s28 = sphi %s3358_s28, %s4662_s28   ;;  %s3280_s27 = sphi %s3356_s27, %s4661_s27  }
  0x10   : > { %4493 = sst [smem:[#allocation26_spill]] %s3300_s10  ;;  %s48_s12 = sadd.s32 1, %s3288_s29 }
  0x11   : > { %p39_p0 = scmp.ge.s32.totalorder %s38_s11, 2  ;;  %p55_p1 = scmp.ne.s32.totalorder %s3288_s29, %s3284_s28 }
  0x12   : > { %p56_p2 = scmp.eq.s32.totalorder %s3300_s10, 0  ;;  %p2889_p4 = scmp.lt.s32.totalorder %s3300_s10, 2 }
  0x13   : > { %s4666_s11 = smov (%p39_p0, %s38_s11), 0  ;;  %s3397_s14 = sand.u32 1, %s3288_s29  }
  0x14   : > { %4494 = sst [smem:[#allocation27_spill]] %s4666_s11  ;;  %p57_p3 = por %p56_p2, %p55_p1 }
  0x15   : > { %s45_s13 = ssub.s32 %s3296_s9, %s4666_s11  ;;  %s2174_s15 = sshll.u32 %s3397_s14, 1 }
  0x16   : > { %p46_p5 = scmp.eq.s32.totalorder %s45_s13, 0  ;;  %s2175_s16 = sshll.u32 %s3296_s9, 1 }
  0x17   : > { %p3401_p6 = pnand %p2889_p4, %p57_p3  ;;  %s328_s19 = sand.u32 1, %s3300_s10  }
  0x18   : > { %s3406_s18 = scalar_select %p46_p5, %s3288_s29, %s48_s12  }
  0x19   : > { %s4497_s1 = sld [smem:[#allocation106_spill]]  ;;  %s332_s23 = scalar_lea.vmem [#allocation7], %s2174_s15 }
  0x1a   : > { %4496 = sst [smem:[#allocation28_spill]] %s3406_s18  ;;  %s340_s24 = sshll.u32 %s332_s23, 4  ;;  %s341_s24 = int_to_ptr.vmem [resolvable:$true] %s340_s24 }
  0x1b   : > { %s2178_s26 = sshll.u32 %s3397_s14, 10  ;;  %s3417_s13 = scalar_lea.sflag [#allocation8], %s328_s19 }
  0x1c   : > { %s351_s12 = scalar_lea.vmem [#allocation9], %s2178_s26  ;;  %s3425_s20 = sadd.s32 4294967295, %s3300_s10  }
  0x1d   : > { %s362_s11 = sshll.u32 %s351_s12, 4  ;;  %p61_p7 = scmp.ne.s32.totalorder %s3284_s28, %s3280_s27  ;;  %s3422_s11 = int_to_ptr.vmem [resolvable:$true] %s362_s11 }
  0x1e   : > { %p62_p8 = scmp.eq.s32.totalorder %s3425_s20, 0  ;;  %p2171_p9 = scmp.ge.s32.totalorder %s3300_s10, 1 }
  0x1f   : > { %s336_s22 = scalar_lea.hbm %s4497_s1, %s2175_s16  ;;  %p282_p10 = scmp.lt.s32.totalorder %s3300_s10, 3 }
  0x20   : > { %s338_s25 = sshll.u32 %s336_s22, 4  ;;  %p3434_p11 = por %p62_p8, %p61_p7  ;;  %s339_s25 = int_to_ptr.hbm [resolvable:$true] %s338_s25 }
  0x21   : > { %2884 = dma.hbm_to_vmem [thread:$0]  (!%p3401_p6), %s339_s25, 32, %s341_s24, %s3417_s13  }
  0x22   : > { %p3438_p12 = pnand %p2171_p9, %p282_p10  ;;  %s4500_s3 = sld [smem:[#allocation107_spill]] }
  0x23   : > { %s3302_s27 = smov [#allocation10]   ;;  %s317_s22 = scalar_lea.hbm %s4399_s0, %s2175_s16 }
  0x24   : > { %p2874_p13 = pneg %p3438_p12  ;;  %s298_s25 = sshll.u32 %s3302_s27, 4  ;;  %s299_s25 = int_to_ptr.vmem [resolvable:$true] %s298_s25 }
  0x25   : > { %s313_s23 = scalar_lea.vmem [#allocation4], %s2174_s15  ;;  %s310_s18 = scalar_lea.sflag [#allocation5], %s3397_s14 }
  0x26   : > { %p2875_p0 = pnand %p2874_p13, %p62_p8  ;;  %s321_s1 = sshll.u32 %s313_s23, 4  ;;  %s322_s1 = int_to_ptr.vmem [resolvable:$true] %s321_s1 }
  0x27   : > { %s2715_s27 = sshll.u32 %s3296_s9, 10  ;;  %s3303_s12 = smov 512  }
  0x28   : > { %s296_s24 = sshll.u32 %s4500_s3, 4  ;;  %s319_s3 = sshll.u32 %s317_s22, 4  ;;  %s297_s24 = int_to_ptr.hbm [resolvable:$true] %s296_s24  ;;  %s320_s3 = int_to_ptr.hbm [resolvable:$true] %s319_s3 }
  0x29   : > { %2877 = dma.hbm_to_vmem [thread:$0]  (!%p2875_p0), %s297_s24, 128, %s299_s25, [#allocation11]  }
  0x2a   : > { %2881 = dma.hbm_to_vmem [thread:$0]  (!%p3401_p6), %s320_s3, 32, %s322_s1, %s310_s18  }
  0x2b   : > { %s359_s8 = scalar_lea.hbm %s4401_s2, %s2715_s27  ;;  %s3304_s6 = smov 32  }
  0x2c   : > { %s360_s26 = sshll.u32 %s359_s8, 4  ;;  %374 = sbr.rel (%p3438_p12) target bundleno = 698 (0x2ba), region = 36  ;;  %s361_s26 = int_to_ptr.hbm [resolvable:$true] %s360_s26 }
  0x2d   : > { %2887 = dma.hbm_to_vmem [thread:$0]  (!%p3401_p6), %s361_s26, 16384, %s3422_s11, %s3417_s13, %s3303_s12, %s3303_s12, %s3304_s6  }
  0x31   : > { %s376_s15 = sand.u32 1, %s3284_s28  }
  0x32   : > { %s2183_s14 = sshll.u32 %s376_s15, 1  ;;  %s377_s16 = scalar_lea.sflag [#allocation5], %s376_s15 }
  0x33   : > { %s3470_s1 = scalar_lea.vmem [#allocation4], %s2183_s14 }
  0x34   : > { %3255 = dma.done.wait (%p3434_p11), %s377_s16, 32  }
  0x35   : > { %3257 = vsyncadd (%p3434_p11), %s377_s16, 4294967264  ;;  %s386_s3 = sand.u32 1, %s3425_s20   ;;  %s3477_s6 = scalar_lea.vmem [#allocation7], %s2183_s14 }
  0x36   : > { %s387_s8 = scalar_lea.sflag [#allocation8], %s386_s3 }
  0x37   : > { %3259 = dma.done.wait (%p3434_p11), %s387_s8, 16416  }
  0x38   : > { %3261 = vsyncadd (%p3434_p11), %s387_s8, 4294950880  ;;  %s2185_s29 = sshll.u32 %s376_s15, 10 }
  0x39   : > { %s3483_s10 = scalar_lea.vmem [#allocation9], %s2185_s29 }
  0x3a   : > { %3263 = dma.done.wait (%p62_p8), [#allocation11], 128  }
  0x3b   : > { %3265 = vsyncadd (%p62_p8), [#allocation11], 4294967168  ;;  %p2187_p1 = scmp.ne.s32.totalorder %s3292_s30, 0 }
  0x3d   : > { %456 = sbr.rel (%p2187_p1) target bundleno = 71 (0x47), region = 56 }
  0x42   : > { %v3305_v0 = vmov 0.0  }
  0x43   : > { %457 = vst [vmem:[#allocation2] sm:$0xff] %v3305_v0 }
  0x44   : > { %458 = vst [vmem:[#allocation2 + $0x8] sm:$0xff] %v3305_v0 }
  0x45   : > { %459 = vst [vmem:[#allocation3 + $0x8] sm:$0xff] %v3305_v0 }
  0x46   : > { %460 = vst [vmem:[#allocation3] sm:$0xff] %v3305_v0 }
  0x47 PF: > { %v2414_v1 = vld [vmem:[%s3483_s10 + $0x1c0] sm:$0xf]  ;;  %v2772_v6 = vld [vmem:[%s3483_s10 + $0x1c4] sm:$0xf]  ;;  %vm1460_vm0 = vcmask 1041408   ;;  %vm1462_vm1 = vcmask 1045508  }
  0x48   : > { %v2776_v2 = vld [vmem:[%s3483_s10 + $0x1dc] sm:$0xf0]  ;;  %v2416_v7 = vld [vmem:[%s3483_s10 + $0x1e0] sm:$0xf0]  ;;  %vm1464_vm2 = vcmask 1043456   ;;  %p2700_p2 = scmp.ne.s32.totalorder %s3292_s30, 1 }
  0x49   : > { %v2670_v3 = vld [vmem:[%s3483_s10 + $0x3c0] sm:$0xf]  ;;  %v3493_v4 = vor.u32 %v2776_v2, %v2414_v1  ;;  %v3500_v9 = vor.u32 %v2772_v6, %v2416_v7  ;;  %v2836_v10 = vld [vmem:[%s3483_s10 + $0x3c4] sm:$0xf] }
  0x4a   : > { %v2840_v5 = vld [vmem:[%s3483_s10 + $0x3dc] sm:$0xf0]  ;;  %v2672_v11 = vld [vmem:[%s3483_s10 + $0x3e0] sm:$0xf0] }
  0x4b   : > { %v3498_v8 = vor.u32 %v2840_v5, %v2670_v3  ;;  %v2382_v12 = vld [vmem:[%s3483_s10 + $0x180] sm:$0xf]  ;;  %1238 = vmatpush.bf16.msra.mxu0 %v3493_v4  ;;  %v3506_v13 = vor.u32 %v2836_v10, %v2672_v11  ;;  %1264 = vmatpush.bf16.msra.mxu2 %v3500_v9  ;;  %v2764_v19 = vld [vmem:[%s3483_s10 + $0x184] sm:$0xf] }
  0x4c   : > { %v2768_v14 = vld [vmem:[%s3483_s10 + $0x19c] sm:$0xf0]  ;;  %v2384_v20 = vld [vmem:[%s3483_s10 + $0x1a0] sm:$0xf0] }
  0x4d   : > { %v2638_v15 = vld [vmem:[%s3483_s10 + $0x380] sm:$0xf]  ;;  %1251 = vmatpush.bf16.msra.mxu1 %v3498_v8  ;;  %v3513_v17 = vor.u32 %v2768_v14, %v2382_v12  ;;  %v2828_v21 = vld [vmem:[%s3483_s10 + $0x384] sm:$0xf]  ;;  %1277 = vmatpush.bf16.msra.mxu3 %v3506_v13  ;;  %v3521_v22 = vor.u32 %v2764_v19, %v2384_v20 }
  0x4e   : > { %v2832_v16 = vld [vmem:[%s3483_s10 + $0x39c] sm:$0xf0]  ;;  %v2640_v23 = vld [vmem:[%s3483_s10 + $0x3a0] sm:$0xf0] }
  0x4f   : > { %v3515_v18 = vor.u32 %v2832_v16, %v2638_v15  ;;  %v2350_v24 = vld [vmem:[%s3483_s10 + $0x140] sm:$0xf]  ;;  %v3526_v26 = vor.u32 %v2828_v21, %v2640_v23  ;;  %v2756_v29 = vld [vmem:[%s3483_s10 + $0x144] sm:$0xf]  ;;  %1239 = vmatpush.bf16.msra.mxu0 %v3513_v17  ;;  %1265 = vmatpush.bf16.msra.mxu2 %v3521_v22 }
  0x50   : > { %v2760_v25 = vld [vmem:[%s3483_s10 + $0x15c] sm:$0xf0]  ;;  %v2352_v31 = vld [vmem:[%s3483_s10 + $0x160] sm:$0xf0] }
  0x51   : > { %v2606_v27 = vld [vmem:[%s3483_s10 + $0x340] sm:$0xf]  ;;  %v3532_v30 = vor.u32 %v2760_v25, %v2350_v24  ;;  %v2820_v32 = vld [vmem:[%s3483_s10 + $0x344] sm:$0xf]  ;;  %1252 = vmatpush.bf16.msra.mxu1 %v3515_v18  ;;  %v3541_v35 = vor.u32 %v2756_v29, %v2352_v31  ;;  %1278 = vmatpush.bf16.msra.mxu3 %v3526_v26 }
  0x52   : > { %v2824_v28 = vld [vmem:[%s3483_s10 + $0x35c] sm:$0xf0]  ;;  %v2608_v33 = vld [vmem:[%s3483_s10 + $0x360] sm:$0xf0] }
  0x53   : > { %v3539_v34 = vor.u32 %v2824_v28, %v2606_v27  ;;  %v2318_v36 = vld [vmem:[%s3483_s10 + $0x100] sm:$0xf]  ;;  %v3547_v39 = vor.u32 %v2820_v32, %v2608_v33  ;;  %v2748_v41 = vld [vmem:[%s3483_s10 + $0x104] sm:$0xf]  ;;  %1240 = vmatpush.bf16.msra.mxu0 %v3532_v30  ;;  %1266 = vmatpush.bf16.msra.mxu2 %v3541_v35 }
  0x54   : > { %v2752_v37 = vld [vmem:[%s3483_s10 + $0x11c] sm:$0xf0]  ;;  %v2320_v42 = vld [vmem:[%s3483_s10 + $0x120] sm:$0xf0] }
  0x55   : > { %v2574_v38 = vld [vmem:[%s3483_s10 + $0x300] sm:$0xf]  ;;  %v2812_v43 = vld [vmem:[%s3483_s10 + $0x304] sm:$0xf]  ;;  %v3555_v45 = vor.u32 %v2752_v37, %v2318_v36  ;;  %1253 = vmatpush.bf16.msra.mxu1 %v3539_v34  ;;  %v3561_v47 = vor.u32 %v2748_v41, %v2320_v42  ;;  %1279 = vmatpush.bf16.msra.mxu3 %v3547_v39  ;;  %v2422_v41 = vld [vmem:[%s3483_s10 + $0x1c8] sm:$0xf] }
  0x56   : > { %v2816_v40 = vld [vmem:[%s3483_s10 + $0x31c] sm:$0xf0]  ;;  %v2576_v44 = vld [vmem:[%s3483_s10 + $0x320] sm:$0xf0]  ;;  %v2777_v42 = vld [vmem:[%s3483_s10 + $0x1e4] sm:$0xf0] }
  0x57   : > { %v3559_v46 = vor.u32 %v2816_v40, %v2574_v38  ;;  %v2286_v48 = vld [vmem:[%s3483_s10 + $0xc0] sm:$0xf]  ;;  %v3567_v51 = vor.u32 %v2812_v43, %v2576_v44  ;;  %v2740_v53 = vld [vmem:[%s3483_s10 + $0xc4] sm:$0xf]  ;;  %1241 = vmatpush.bf16.msra.mxu0 %v3555_v45  ;;  %1267 = vmatpush.bf16.msra.mxu2 %v3561_v47  ;;  %v2678_v43 = vld [vmem:[%s3483_s10 + $0x3c8] sm:$0xf] }
  0x58   : > { %v2744_v49 = vld [vmem:[%s3483_s10 + $0xdc] sm:$0xf0]  ;;  %v2288_v54 = vld [vmem:[%s3483_s10 + $0xe0] sm:$0xf0] }
  0x59   : > { %v2542_v50 = vld [vmem:[%s3483_s10 + $0x2c0] sm:$0xf]  ;;  %v2804_v55 = vld [vmem:[%s3483_s10 + $0x2c4] sm:$0xf]  ;;  %v3575_v57 = vor.u32 %v2744_v49, %v2286_v48  ;;  %1254 = vmatpush.bf16.msra.mxu1 %v3559_v46  ;;  %v3581_v59 = vor.u32 %v2740_v53, %v2288_v54  ;;  %1280 = vmatpush.bf16.msra.mxu3 %v3567_v51  ;;  %v2841_v48 = vld [vmem:[%s3483_s10 + $0x3e4] sm:$0xf0] }
  0x5a   : > { %v2808_v52 = vld [vmem:[%s3483_s10 + $0x2dc] sm:$0xf0]  ;;  %v2544_v56 = vld [vmem:[%s3483_s10 + $0x2e0] sm:$0xf0]  ;;  %v2773_v49 = vld [vmem:[%s3483_s10 + $0x1cc] sm:$0xf] }
  0x5b   : > { %v3579_v58 = vor.u32 %v2808_v52, %v2542_v50  ;;  %v2254_v60 = vld [vmem:[%s3483_s10 + $0x80] sm:$0xf]  ;;  %v3587_v63 = vor.u32 %v2804_v55, %v2544_v56  ;;  %v2732_v1 = vld [vmem:[%s3483_s10 + $0x84] sm:$0xf]  ;;  %1242 = vmatpush.bf16.msra.mxu0 %v3575_v57  ;;  %1268 = vmatpush.bf16.msra.mxu2 %v3581_v59  ;;  %v2424_v50 = vld [vmem:[%s3483_s10 + $0x1e8] sm:$0xf0] }
  0x5c   : > { %v2736_v61 = vld [vmem:[%s3483_s10 + $0x9c] sm:$0xf0]  ;;  %v2256_v2 = vld [vmem:[%s3483_s10 + $0xa0] sm:$0xf0]  ;;  %v2837_v54 = vld [vmem:[%s3483_s10 + $0x3cc] sm:$0xf] }
  0x5d   : > { %v2510_v62 = vld [vmem:[%s3483_s10 + $0x280] sm:$0xf]  ;;  %v2796_v3 = vld [vmem:[%s3483_s10 + $0x284] sm:$0xf]  ;;  %v3595_v6 = vor.u32 %v2736_v61, %v2254_v60  ;;  %1255 = vmatpush.bf16.msra.mxu1 %v3579_v58  ;;  %v3601_v10 = vor.u32 %v2732_v1, %v2256_v2  ;;  %1281 = vmatpush.bf16.msra.mxu3 %v3587_v63  ;;  %v2680_v55 = vld [vmem:[%s3483_s10 + $0x3e8] sm:$0xf0]  ;;  %v3654_v60 = vor.u32 %v2777_v42, %v2422_v41 }
  0x5e   : > { %v2800_v0 = vld [vmem:[%s3483_s10 + $0x29c] sm:$0xf0]  ;;  %v2512_v5 = vld [vmem:[%s3483_s10 + $0x2a0] sm:$0xf0]  ;;  %v3656_v61 = vor.u32 %v2841_v48, %v2678_v43  ;;  %v2769_v1 = vld [vmem:[%s3483_s10 + $0x1a4] sm:$0xf0] }
  0x5f   : > { %v3599_v7 = vor.u32 %v2800_v0, %v2510_v62  ;;  %v2222_v11 = vld [vmem:[%s3483_s10 + $0x40] sm:$0xf]  ;;  %v3607_v15 = vor.u32 %v2796_v3, %v2512_v5  ;;  %v2724_v19 = vld [vmem:[%s3483_s10 + $0x44] sm:$0xf]  ;;  %1243 = vmatpush.bf16.msra.mxu0 %v3595_v6  ;;  %1269 = vmatpush.bf16.msra.mxu2 %v3601_v10  ;;  %v3658_v62 = vor.u32 %v2773_v49, %v2424_v50  ;;  %v2390_v0 = vld [vmem:[%s3483_s10 + $0x188] sm:$0xf] }
  0x60   : > { %v2728_v12 = vld [vmem:[%s3483_s10 + $0x5c] sm:$0xf0]  ;;  %v2224_v20 = vld [vmem:[%s3483_s10 + $0x60] sm:$0xf0]  ;;  %v2646_v2 = vld [vmem:[%s3483_s10 + $0x388] sm:$0xf]  ;;  %v3664_v3 = vor.u32 %v2837_v54, %v2680_v55 }
  0x61   : > { %v2478_v14 = vld [vmem:[%s3483_s10 + $0x240] sm:$0xf]  ;;  %v2788_v21 = vld [vmem:[%s3483_s10 + $0x244] sm:$0xf]  ;;  %v3615_v24 = vor.u32 %v2728_v12, %v2222_v11  ;;  %1256 = vmatpush.bf16.msra.mxu1 %v3599_v7  ;;  %v3623_v29 = vor.u32 %v2724_v19, %v2224_v20  ;;  %1282 = vmatpush.bf16.msra.mxu3 %v3607_v15  ;;  %v2833_v5 = vld [vmem:[%s3483_s10 + $0x3a4] sm:$0xf0]  ;;  %v3676_v20 = vor.u32 %v2769_v1, %v2390_v0 }
  0x62   : > { %v2792_v16 = vld [vmem:[%s3483_s10 + $0x25c] sm:$0xf0]  ;;  %v2480_v23 = vld [vmem:[%s3483_s10 + $0x260] sm:$0xf0]  ;;  %v2765_v11 = vld [vmem:[%s3483_s10 + $0x18c] sm:$0xf] }
  0x63   : > { %v2190_v25 = vld [vmem:[%s3483_s10] sm:$0xf]  ;;  %v3621_v28 = vor.u32 %v2792_v16, %v2478_v14  ;;  %v2716_v33 = vld [vmem:[%s3483_s10 + $0x4] sm:$0xf]  ;;  %v3629_v36 = vor.u32 %v2788_v21, %v2480_v23  ;;  %1244 = vmatpush.bf16.msra.mxu0 %v3615_v24  ;;  %1270 = vmatpush.bf16.msra.mxu2 %v3623_v29  ;;  %v2392_v12 = vld [vmem:[%s3483_s10 + $0x1a8] sm:$0xf0]  ;;  %v3680_v21 = vor.u32 %v2833_v5, %v2646_v2 }
  0x64   : > { %v2720_v27 = vld [vmem:[%s3483_s10 + $0x1c] sm:$0xf0]  ;;  %v2192_v37 = vld [vmem:[%s3483_s10 + $0x20] sm:$0xf0]  ;;  %v2829_v14 = vld [vmem:[%s3483_s10 + $0x38c] sm:$0xf]  ;;  %v3682_v23 = vor.u32 %v2765_v11, %v2392_v12 }
  0x65   : > { %v2446_v31 = vld [vmem:[%s3483_s10 + $0x200] sm:$0xf]  ;;  %v2780_v38 = vld [vmem:[%s3483_s10 + $0x204] sm:$0xf]  ;;  %v3638_v44 = vor.u32 %v2720_v27, %v2190_v25  ;;  %1257 = vmatpush.bf16.msra.mxu1 %v3621_v28  ;;  %v3647_v53 = vor.u32 %v2716_v33, %v2192_v37  ;;  %1283 = vmatpush.bf16.msra.mxu3 %v3629_v36  ;;  %v2648_v16 = vld [vmem:[%s3483_s10 + $0x3a8] sm:$0xf0] }
  0x66   : > { %v2784_v32 = vld [vmem:[%s3483_s10 + $0x21c] sm:$0xf0]  ;;  %v2448_v40 = vld [vmem:[%s3483_s10 + $0x220] sm:$0xf0]  ;;  %v591_v19 = vld [vmem:[%s3470_s1] sm:$0x3] }
  0x67   : > { %v3645_v52 = vor.u32 %v2784_v32, %v2446_v31  ;;  %v3652_v56 = vor.u32 %v2780_v38, %v2448_v40  ;;  %1245 = vmatpush.bf16.msra.mxu0 %v3638_v44  ;;  %1271 = vmatpush.bf16.msra.mxu2 %v3647_v53  ;;  %593 = vst [vmem:[#allocation1] ss:$9 sm:$0xff] %v591_v19  ;;  %v2358_v25 = vld [vmem:[%s3483_s10 + $0x148] sm:$0xf]  ;;  %v2757_v37 = vld [vmem:[%s3483_s10 + $0x14c] sm:$0xf] }
  0x68   : > { %v2761_v27 = vld [vmem:[%s3483_s10 + $0x164] sm:$0xf0]  ;;  %v3688_v32 = vor.u32 %v2829_v14, %v2648_v16  ;;  %v2360_v38 = vld [vmem:[%s3483_s10 + $0x168] sm:$0xf0]  ;;  %v1477_v0 = vld [vmem:[%s3477_s6] sm:$0x3] }
  0x69   : > { %1258 = vmatpush.bf16.msra.mxu1 %v3645_v52  ;;  %1284 = vmatpush.bf16.msra.mxu3 %v3652_v56  ;;  %v2614_v31 = vld [vmem:[%s3483_s10 + $0x348] sm:$0xf]  ;;  %v2821_v40 = vld [vmem:[%s3483_s10 + $0x34c] sm:$0xf]  ;;  %v3696_v42 = vor.u32 %v2761_v27, %v2358_v25  ;;  %v3704_v50 = vor.u32 %v2757_v37, %v2360_v38 }
  0x6a   : > { %4501 = vst [vmem:[#allocation29_spill] sm:$0xff] %v3688_v32  ;;  %v2825_v33 = vld [vmem:[%s3483_s10 + $0x364] sm:$0xf0]  ;;  %v2616_v41 = vld [vmem:[%s3483_s10 + $0x368] sm:$0xf0] }
  0x6b   : > { %1290 = vmatpush.bf16.msrb.mxu0 %v3654_v60  ;;  %1316 = vmatpush.bf16.msrb.mxu2 %v3658_v62  ;;  %4502 = vst [vmem:[#allocation30_spill] sm:$0xff] %v3696_v42  ;;  %v2326_v43 = vld [vmem:[%s3483_s10 + $0x108] sm:$0xf]  ;;  %v3702_v49 = vor.u32 %v2825_v33, %v2614_v31  ;;  %v3710_v1 = vor.u32 %v2821_v40, %v2616_v41  ;;  %v2749_v2 = vld [vmem:[%s3483_s10 + $0x10c] sm:$0xf] }
  0x6c   : > { %v2753_v48 = vld [vmem:[%s3483_s10 + $0x124] sm:$0xf0]  ;;  %4504 = vst [vmem:[#allocation32_spill] sm:$0xff] %v3704_v50  ;;  %v2328_v5 = vld [vmem:[%s3483_s10 + $0x128] sm:$0xf0] }
  0x6d   : > { %1303 = vmatpush.bf16.msrb.mxu1 %v3656_v61  ;;  %1329 = vmatpush.bf16.msrb.mxu3 %v3664_v3  ;;  %4503 = vst [vmem:[#allocation31_spill] sm:$0xff] %v3702_v49  ;;  %v2582_v54 = vld [vmem:[%s3483_s10 + $0x308] sm:$0xf]  ;;  %v2813_v11 = vld [vmem:[%s3483_s10 + $0x30c] sm:$0xf]  ;;  %v3721_v19 = vor.u32 %v2753_v48, %v2326_v43  ;;  %v3728_v27 = vor.u32 %v2749_v2, %v2328_v5 }
  0x6e   : > { %v2817_v55 = vld [vmem:[%s3483_s10 + $0x324] sm:$0xf0]  ;;  %4505 = vst [vmem:[#allocation33_spill] sm:$0xff] %v3710_v1  ;;  %v2584_v12 = vld [vmem:[%s3483_s10 + $0x328] sm:$0xf0]  ;;  %v3716_v14 = vld [vmem:[#allocation1] sm:$0xff] }
  0x6f   : > { %1291 = vmatpush.bf16.msrb.mxu0 %v3676_v20  ;;  %1317 = vmatpush.bf16.msrb.mxu2 %v3682_v23  ;;  %v3718_v16 = vld [vmem:[#allocation1 + $0x9] sm:$0xff]  ;;  %4506 = vst [vmem:[#allocation34_spill] sm:$0xff] %v3721_v19  ;;  %v3726_v25 = vor.u32 %v2817_v55, %v2582_v54  ;;  %v2294_v31 = vld [vmem:[%s3483_s10 + $0xc8] sm:$0xf]  ;;  %v3734_v38 = vor.u32 %v2813_v11, %v2584_v12  ;;  %v2741_v41 = vld [vmem:[%s3483_s10 + $0xcc] sm:$0xf] }
  0x70   : > { %1272 = vmatmul.bf16.vlgmr.msra.gmra.mxu2 %v3716_v14  ;;  %1479 = vst [vmem:[#allocation1] ss:$9 sm:$0xff] %v1477_v0  ;;  %v2745_v33 = vld [vmem:[%s3483_s10 + $0xe4] sm:$0xf0]  ;;  %v2296_v43 = vld [vmem:[%s3483_s10 + $0xe8] sm:$0xf0]  ;;  %1246 = vmatmul.bf16.vlgmr.msra.gmra.mxu0 %v3716_v14 }
  0x71   : > { %1304 = vmatpush.bf16.msrb.mxu1 %v3680_v21  ;;  %1330 = vmatpush.bf16.msrb.mxu3 %v3688_v32  ;;  %4507 = vst [vmem:[#allocation35_spill] sm:$0xff] %v3726_v25  ;;  %v2550_v37 = vld [vmem:[%s3483_s10 + $0x2c8] sm:$0xf]  ;;  %v2805_v48 = vld [vmem:[%s3483_s10 + $0x2cc] sm:$0xf]  ;;  %v3745_v55 = vor.u32 %v2745_v33, %v2294_v31  ;;  %v3751_v2 = vor.u32 %v2741_v41, %v2296_v43 }
  0x72   : > { %4508 = vst [vmem:[#allocation36_spill] sm:$0xff] %v3728_v27  ;;  %v2809_v40 = vld [vmem:[%s3483_s10 + $0x2e4] sm:$0xf0]  ;;  %1285 = vmatmul.bf16.vlgmr.msra.gmra.mxu3 %v3718_v16  ;;  %v2552_v54 = vld [vmem:[%s3483_s10 + $0x2e8] sm:$0xf0]  ;;  %1259 = vmatmul.bf16.vlgmr.msra.gmra.mxu1 %v3718_v16 }
  0x73   : > { %1292 = vmatpush.bf16.msrb.mxu0 %v3696_v42  ;;  %1318 = vmatpush.bf16.msrb.mxu2 %v3704_v50  ;;  %4509 = vst [vmem:[#allocation37_spill] sm:$0xff] %v3734_v38  ;;  %v3749_v0 = vor.u32 %v2809_v40, %v2550_v37  ;;  %v2262_v5 = vld [vmem:[%s3483_s10 + $0x88] sm:$0xf]  ;;  %v2733_v33 = vld [vmem:[%s3483_s10 + $0x8c] sm:$0xf] }
  0x74   : > { %4510 = vst [vmem:[#allocation38_spill] sm:$0xff] %v3745_v55  ;;  %v2737_v11 = vld [vmem:[%s3483_s10 + $0xa4] sm:$0xf0]  ;;  %v2797_v37 = vld [vmem:[%s3483_s10 + $0x28c] sm:$0xf] }
  0x75   : > { %1305 = vmatpush.bf16.msrb.mxu1 %v3702_v49  ;;  %1331 = vmatpush.bf16.msrb.mxu3 %v3710_v1  ;;  %4511 = vst [vmem:[#allocation39_spill] sm:$0xff] %v3749_v0  ;;  %v2518_v12 = vld [vmem:[%s3483_s10 + $0x288] sm:$0xf]  ;;  %v3757_v1 = vor.u32 %v2805_v48, %v2552_v54  ;;  %v2520_v40 = vld [vmem:[%s3483_s10 + $0x2a8] sm:$0xf0]  ;;  %v3765_v41 = vor.u32 %v2737_v11, %v2262_v5 }
  0x76   : > { %4512 = vst [vmem:[#allocation40_spill] sm:$0xff] %v3751_v2  ;;  %v2801_v31 = vld [vmem:[%s3483_s10 + $0x2a4] sm:$0xf0]  ;;  %v2725_v11 = vld [vmem:[%s3483_s10 + $0x4c] sm:$0xf] }
  0x77   : > { %1293 = vmatpush.bf16.msrb.mxu0 %v3721_v19  ;;  %1319 = vmatpush.bf16.msrb.mxu2 %v3728_v27  ;;  %4513 = vst [vmem:[#allocation41_spill] sm:$0xff] %v3757_v1  ;;  %v3769_v43 = vor.u32 %v2801_v31, %v2518_v12  ;;  %v2230_v54 = vld [vmem:[%s3483_s10 + $0x48] sm:$0xf]  ;;  %v2488_v12 = vld [vmem:[%s3483_s10 + $0x268] sm:$0xf0] }
  0x78   : > { %4514 = vst [vmem:[#allocation42_spill] sm:$0xff] %v3765_v41  ;;  %v2486_v27 = vld [vmem:[%s3483_s10 + $0x248] sm:$0xf]  ;;  %v2717_v19 = vld [vmem:[%s3483_s10 + $0xc] sm:$0xf] }
  0x79   : > { %1306 = vmatpush.bf16.msrb.mxu1 %v3726_v25  ;;  %1332 = vmatpush.bf16.msrb.mxu3 %v3734_v38  ;;  %v2264_v25 = vld [vmem:[%s3483_s10 + $0xa8] sm:$0xf0]  ;;  %4515 = vst [vmem:[#allocation43_spill] sm:$0xff] %v3769_v43  ;;  %v2729_v38 = vld [vmem:[%s3483_s10 + $0x64] sm:$0xf0] }
  0x7a   : > { %v3771_v48 = vor.u32 %v2733_v33, %v2264_v25  ;;  %v2793_v5 = vld [vmem:[%s3483_s10 + $0x264] sm:$0xf0]  ;;  %v3785_v25 = vor.u32 %v2729_v38, %v2230_v54  ;;  %v2200_v54 = vld [vmem:[%s3483_s10 + $0x28] sm:$0xf0]  ;;  %v2778_v49 = vld [vmem:[%s3483_s10 + $0x1ec] sm:$0xf0] }
  0x7b   : > { %1294 = vmatpush.bf16.msrb.mxu0 %v3745_v55  ;;  %1320 = vmatpush.bf16.msrb.mxu2 %v3751_v2  ;;  %v3777_v55 = vor.u32 %v2797_v37, %v2520_v40  ;;  %v2789_v2 = vld [vmem:[%s3483_s10 + $0x24c] sm:$0xf]  ;;  %v2198_v31 = vld [vmem:[%s3483_s10 + $0x8] sm:$0xf]  ;;  %v3791_v37 = vor.u32 %v2793_v5, %v2486_v27  ;;  %v2686_v27 = vld [vmem:[%s3483_s10 + $0x3d0] sm:$0xf] }
  0x7c   : > { %4516 = vst [vmem:[#allocation44_spill] sm:$0xff] %v3771_v48  ;;  %v2721_v33 = vld [vmem:[%s3483_s10 + $0x24] sm:$0xf0]  ;;  %v3799_v38 = vor.u32 %v2789_v2, %v2488_v12  ;;  %v2456_v50 = vld [vmem:[%s3483_s10 + $0x228] sm:$0xf0]  ;;  %v3817_v12 = vor.u32 %v2717_v19, %v2200_v54 }
  0x7d   : > { %1307 = vmatpush.bf16.msrb.mxu1 %v3749_v0  ;;  %1333 = vmatpush.bf16.msrb.mxu3 %v3757_v1  ;;  %4517 = vst [vmem:[#allocation45_spill] sm:$0xff] %v3777_v55  ;;  %v2232_v0 = vld [vmem:[%s3483_s10 + $0x68] sm:$0xf0]  ;;  %v2454_v1 = vld [vmem:[%s3483_s10 + $0x208] sm:$0xf] }
  0x7e   : > { %4518 = vst [vmem:[#allocation46_spill] sm:$0xff] %v3785_v25  ;;  %v3793_v40 = vor.u32 %v2725_v11, %v2232_v0  ;;  %v3808_v0 = vor.u32 %v2721_v33, %v2198_v31  ;;  %v2842_v5 = vld [vmem:[%s3483_s10 + $0x3ec] sm:$0xf0]  ;;  %v2774_v11 = vld [vmem:[%s3483_s10 + $0x1d4] sm:$0xf] }
  0x7f   : > { %1295 = vmatpush.bf16.msrb.mxu0 %v3765_v41  ;;  %1321 = vmatpush.bf16.msrb.mxu2 %v3771_v48  ;;  %4519 = vst [vmem:[#allocation47_spill] sm:$0xff] %v3791_v37  ;;  %v2785_v41 = vld [vmem:[%s3483_s10 + $0x224] sm:$0xf0]  ;;  %v2430_v48 = vld [vmem:[%s3483_s10 + $0x1d0] sm:$0xf] }
  0x80   : > { %4520 = vst [vmem:[#allocation48_spill] sm:$0xff] %v3793_v40  ;;  %v3815_v2 = vor.u32 %v2785_v41, %v2454_v1  ;;  %v2688_v42 = vld [vmem:[%s3483_s10 + $0x3f0] sm:$0xf0]  ;;  %v3824_v33 = vor.u32 %v2778_v49, %v2430_v48  ;;  %v2770_v1 = vld [vmem:[%s3483_s10 + $0x1ac] sm:$0xf0] }
  0x81   : > { %1308 = vmatpush.bf16.msrb.mxu1 %v3769_v43  ;;  %1334 = vmatpush.bf16.msrb.mxu3 %v3777_v55  ;;  %4521 = vst [vmem:[#allocation49_spill] sm:$0xff] %v3799_v38  ;;  %v2781_v43 = vld [vmem:[%s3483_s10 + $0x20c] sm:$0xf]  ;;  %v2432_v55 = vld [vmem:[%s3483_s10 + $0x1f0] sm:$0xf0] }
  0x82   : > { %4522 = vst [vmem:[#allocation50_spill] sm:$0xff] %v3808_v0  ;;  %v3822_v31 = vor.u32 %v2781_v43, %v2456_v50  ;;  %v3828_v32 = vor.u32 %v2774_v11, %v2432_v55  ;;  %v2654_v41 = vld [vmem:[%s3483_s10 + $0x390] sm:$0xf]  ;;  %v2400_v50 = vld [vmem:[%s3483_s10 + $0x1b0] sm:$0xf0] }
  0x83   : > { %1296 = vmatpush.bf16.msrb.mxu0 %v3785_v25  ;;  %1322 = vmatpush.bf16.msrb.mxu2 %v3793_v40  ;;  %4523 = vst [vmem:[#allocation51_spill] sm:$0xff] %v3815_v2  ;;  %v2838_v25 = vld [vmem:[%s3483_s10 + $0x3d4] sm:$0xf]  ;;  %v2398_v40 = vld [vmem:[%s3483_s10 + $0x190] sm:$0xf] }
  0x84   : > { %4524 = vst [vmem:[#allocation52_spill] sm:$0xff] %v3817_v12  ;;  %v3834_v19 = vor.u32 %v2838_v25, %v2688_v42  ;;  %v2834_v54 = vld [vmem:[%s3483_s10 + $0x3ac] sm:$0xf0]  ;;  %v2830_v49 = vld [vmem:[%s3483_s10 + $0x394] sm:$0xf]  ;;  %v3845_v42 = vor.u32 %v2770_v1, %v2398_v40 }
  0x85   : > { %1309 = vmatpush.bf16.msrb.mxu1 %v3791_v37  ;;  %1335 = vmatpush.bf16.msrb.mxu3 %v3799_v38  ;;  %4525 = vst [vmem:[#allocation53_spill] sm:$0xff] %v3822_v31  ;;  %v3826_v37 = vor.u32 %v2842_v5, %v2686_v27  ;;  %v2766_v38 = vld [vmem:[%s3483_s10 + $0x194] sm:$0xf]  ;;  %v3849_v43 = vor.u32 %v2834_v54, %v2654_v41  ;;  %v2366_v25 = vld [vmem:[%s3483_s10 + $0x150] sm:$0xf] }
  0x86   : > { %4526 = vst [vmem:[#allocation54_spill] sm:$0xff] %v3824_v33  ;;  %v2656_v55 = vld [vmem:[%s3483_s10 + $0x3b0] sm:$0xf0]  ;;  %v3851_v48 = vor.u32 %v2766_v38, %v2400_v50  ;;  %v2762_v27 = vld [vmem:[%s3483_s10 + $0x16c] sm:$0xf0] }
  0x87   : > { %4527 = vst [vmem:[#allocation55_spill] sm:$0xff] %v3826_v37  ;;  %1297 = vmatpush.bf16.msrb.mxu0 %v3808_v0  ;;  %1323 = vmatpush.bf16.msrb.mxu2 %v3817_v12  ;;  %v2622_v5 = vld [vmem:[%s3483_s10 + $0x350] sm:$0xf]  ;;  %v3858_v40 = vor.u32 %v2830_v49, %v2656_v55  ;;  %v2758_v1 = vld [vmem:[%s3483_s10 + $0x154] sm:$0xf]  ;;  %v3869_v54 = vor.u32 %v2762_v27, %v2366_v25 }
  0x88   : > { %4528 = vst [vmem:[#allocation56_spill] sm:$0xff] %v3828_v32  ;;  %v2826_v11 = vld [vmem:[%s3483_s10 + $0x36c] sm:$0xf0]  ;;  %v2822_v38 = vld [vmem:[%s3483_s10 + $0x354] sm:$0xf] }
  0x89   : > { %4529 = vst [vmem:[#allocation57_spill] sm:$0xff] %v3834_v19  ;;  %1310 = vmatpush.bf16.msrb.mxu1 %v3815_v2  ;;  %1336 = vmatpush.bf16.msrb.mxu3 %v3822_v31  ;;  %v2624_v41 = vld [vmem:[%s3483_s10 + $0x370] sm:$0xf0]  ;;  %v3873_v50 = vor.u32 %v2826_v11, %v2622_v5  ;;  %v2334_v55 = vld [vmem:[%s3483_s10 + $0x110] sm:$0xf] }
  0x8a   : > { %4530 = vst [vmem:[#allocation58_spill] sm:$0xff] %v3845_v42  ;;  %1324 = vmatmul.bf16.vlgmr.msrb.gmra.mxu2 %v3716_v14  ;;  %1298 = vmatmul.bf16.vlgmr.msrb.gmra.mxu0 %v3716_v14  ;;  %v2818_v25 = vld [vmem:[%s3483_s10 + $0x32c] sm:$0xf0]  ;;  %v2750_v27 = vld [vmem:[%s3483_s10 + $0x114] sm:$0xf] }
  0x8b   : > { %1342 = vmatpush.bf16.msra.mxu0 %v3824_v33  ;;  %1368 = vmatpush.bf16.msra.mxu2 %v3828_v32  ;;  %4531 = vst [vmem:[#allocation59_spill] sm:$0xff] %v3849_v43  ;;  %v2590_v32 = vld [vmem:[%s3483_s10 + $0x310] sm:$0xf]  ;;  %v2814_v5 = vld [vmem:[%s3483_s10 + $0x314] sm:$0xf] }
  0x8c   : > { %4532 = vst [vmem:[#allocation60_spill] sm:$0xff] %v3851_v48  ;;  %1337 = vmatmul.bf16.vlgmr.msrb.gmra.mxu3 %v3718_v16  ;;  %1311 = vmatmul.bf16.vlgmr.msrb.gmra.mxu1 %v3718_v16  ;;  %v2464_v31 = vld [vmem:[%s3483_s10 + $0x230] sm:$0xf0]  ;;  %v2779_v12 = vld [vmem:[%s3483_s10 + $0x1f4] sm:$0xf0] }
  0x8d   : > { %1355 = vmatpush.bf16.msra.mxu1 %v3826_v37  ;;  %1381 = vmatpush.bf16.msra.mxu3 %v3834_v19  ;;  %4533 = vst [vmem:[#allocation61_spill] sm:$0xff] %v3858_v40  ;;  %v2368_v37 = vld [vmem:[%s3483_s10 + $0x170] sm:$0xf0]  ;;  %v2754_v19 = vld [vmem:[%s3483_s10 + $0x12c] sm:$0xf0] }
  0x8e   : > { %4534 = vst [vmem:[#allocation62_spill] sm:$0xff] %v3869_v54  ;;  %v3875_v49 = vor.u32 %v2758_v1, %v2368_v37  ;;  %v2592_v37 = vld [vmem:[%s3483_s10 + $0x330] sm:$0xf0]  ;;  %v3889_v11 = vor.u32 %v2754_v19, %v2334_v55  ;;  %v3893_v1 = vor.u32 %v2818_v25, %v2590_v32  ;;  %v2810_v19 = vld [vmem:[%s3483_s10 + $0x2ec] sm:$0xf0] }
  0x8f   : > { %1343 = vmatpush.bf16.msra.mxu0 %v3845_v42  ;;  %1369 = vmatpush.bf16.msra.mxu2 %v3851_v48  ;;  %4535 = vst [vmem:[#allocation63_spill] sm:$0xff] %v3873_v50  ;;  %v3881_v42 = vor.u32 %v2822_v38, %v2624_v41  ;;  %v2302_v41 = vld [vmem:[%s3483_s10 + $0xd0] sm:$0xf]  ;;  %v3901_v33 = vor.u32 %v2814_v5, %v2592_v37  ;;  %v2742_v55 = vld [vmem:[%s3483_s10 + $0xd4] sm:$0xf] }
  0x90   : > { %4536 = vst [vmem:[#allocation64_spill] sm:$0xff] %v3875_v49  ;;  %v2558_v48 = vld [vmem:[%s3483_s10 + $0x2d0] sm:$0xf]  ;;  %v2806_v32 = vld [vmem:[%s3483_s10 + $0x2d4] sm:$0xf] }
  0x91   : > { %1356 = vmatpush.bf16.msra.mxu1 %v3849_v43  ;;  %1382 = vmatpush.bf16.msra.mxu3 %v3858_v40  ;;  %4537 = vst [vmem:[#allocation65_spill] sm:$0xff] %v3881_v42  ;;  %v2336_v43 = vld [vmem:[%s3483_s10 + $0x130] sm:$0xf0]  ;;  %v2746_v40 = vld [vmem:[%s3483_s10 + $0xec] sm:$0xf0] }
  0x92   : > { %4538 = vst [vmem:[#allocation66_spill] sm:$0xff] %v3889_v11  ;;  %v3895_v38 = vor.u32 %v2750_v27, %v2336_v43  ;;  %v2560_v43 = vld [vmem:[%s3483_s10 + $0x2f0] sm:$0xf0]  ;;  %v3909_v25 = vor.u32 %v2746_v40, %v2302_v41  ;;  %v3913_v27 = vor.u32 %v2810_v19, %v2558_v48  ;;  %v2270_v37 = vld [vmem:[%s3483_s10 + $0x90] sm:$0xf] }
  0x93   : > { %1344 = vmatpush.bf16.msra.mxu0 %v3869_v54  ;;  %1370 = vmatpush.bf16.msra.mxu2 %v3875_v49  ;;  %4539 = vst [vmem:[#allocation67_spill] sm:$0xff] %v3893_v1  ;;  %v2526_v49 = vld [vmem:[%s3483_s10 + $0x290] sm:$0xf]  ;;  %v3921_v54 = vor.u32 %v2806_v32, %v2560_v43  ;;  %v2734_v41 = vld [vmem:[%s3483_s10 + $0x94] sm:$0xf] }
  0x94   : > { %4540 = vst [vmem:[#allocation68_spill] sm:$0xff] %v3895_v38  ;;  %v2802_v40 = vld [vmem:[%s3483_s10 + $0x2ac] sm:$0xf0]  ;;  %v2798_v48 = vld [vmem:[%s3483_s10 + $0x294] sm:$0xf] }
  0x95   : > { %1357 = vmatpush.bf16.msra.mxu1 %v3873_v50  ;;  %1383 = vmatpush.bf16.msra.mxu3 %v3881_v42  ;;  %4541 = vst [vmem:[#allocation69_spill] sm:$0xff] %v3901_v33  ;;  %v2304_v50 = vld [vmem:[%s3483_s10 + $0xf0] sm:$0xf0]  ;;  %v2738_v42 = vld [vmem:[%s3483_s10 + $0xac] sm:$0xf0] }
  0x96   : > { %4542 = vst [vmem:[#allocation70_spill] sm:$0xff] %v3909_v25  ;;  %v3915_v5 = vor.u32 %v2742_v55, %v2304_v50  ;;  %v2528_v50 = vld [vmem:[%s3483_s10 + $0x2b0] sm:$0xf0]  ;;  %v3929_v19 = vor.u32 %v2738_v42, %v2270_v37  ;;  %v3933_v55 = vor.u32 %v2802_v40, %v2526_v49  ;;  %v2238_v43 = vld [vmem:[%s3483_s10 + $0x50] sm:$0xf] }
  0x97   : > { %1345 = vmatpush.bf16.msra.mxu0 %v3889_v11  ;;  %1371 = vmatpush.bf16.msra.mxu2 %v3895_v38  ;;  %4543 = vst [vmem:[#allocation71_spill] sm:$0xff] %v3913_v27  ;;  %v2494_v38 = vld [vmem:[%s3483_s10 + $0x250] sm:$0xf]  ;;  %v2726_v37 = vld [vmem:[%s3483_s10 + $0x54] sm:$0xf] }
  0x98   : > { %4544 = vst [vmem:[#allocation72_spill] sm:$0xff] %v3915_v5  ;;  %v2794_v42 = vld [vmem:[%s3483_s10 + $0x26c] sm:$0xf0]  ;;  %v2496_v49 = vld [vmem:[%s3483_s10 + $0x270] sm:$0xf0] }
  0x99   : > { %1358 = vmatpush.bf16.msra.mxu1 %v3893_v1  ;;  %1384 = vmatpush.bf16.msra.mxu3 %v3901_v33  ;;  %4545 = vst [vmem:[#allocation73_spill] sm:$0xff] %v3921_v54  ;;  %v2272_v1 = vld [vmem:[%s3483_s10 + $0xb0] sm:$0xf0]  ;;  %v2730_v33 = vld [vmem:[%s3483_s10 + $0x6c] sm:$0xf0] }
  0x9a   : > { %4546 = vst [vmem:[#allocation74_spill] sm:$0xff] %v3929_v19  ;;  %v3935_v32 = vor.u32 %v2734_v41, %v2272_v1  ;;  %v3949_v1 = vor.u32 %v2730_v33, %v2238_v43  ;;  %v2206_v40 = vld [vmem:[%s3483_s10 + $0x10] sm:$0xf]  ;;  %v2718_v11 = vld [vmem:[%s3483_s10 + $0x14] sm:$0xf] }
  0x9b   : > { %1346 = vmatpush.bf16.msra.mxu0 %v3909_v25  ;;  %1372 = vmatpush.bf16.msra.mxu2 %v3915_v5  ;;  %4547 = vst [vmem:[#allocation75_spill] sm:$0xff] %v3933_v55  ;;  %v3941_v25 = vor.u32 %v2798_v48, %v2528_v50  ;;  %v2790_v5 = vld [vmem:[%s3483_s10 + $0x254] sm:$0xf]  ;;  %v2722_v41 = vld [vmem:[%s3483_s10 + $0x2c] sm:$0xf0]  ;;  %v3955_v48 = vor.u32 %v2794_v42, %v2494_v38 }
  0x9c   : > { %4548 = vst [vmem:[#allocation76_spill] sm:$0xff] %v3935_v32  ;;  %v3963_v33 = vor.u32 %v2790_v5, %v2496_v49  ;;  %v2208_v43 = vld [vmem:[%s3483_s10 + $0x30] sm:$0xf0]  ;;  %v2694_v38 = vld [vmem:[%s3483_s10 + $0x3d8] sm:$0xf] }
  0x9d   : > { %1359 = vmatpush.bf16.msra.mxu1 %v3913_v27  ;;  %1385 = vmatpush.bf16.msra.mxu3 %v3921_v54  ;;  %4549 = vst [vmem:[#allocation77_spill] sm:$0xff] %v3941_v25  ;;  %v2240_v27 = vld [vmem:[%s3483_s10 + $0x70] sm:$0xf0]  ;;  %v2462_v54 = vld [vmem:[%s3483_s10 + $0x210] sm:$0xf]  ;;  %v3981_v49 = vor.u32 %v2718_v11, %v2208_v43 }
  0x9e   : > { %4550 = vst [vmem:[#allocation78_spill] sm:$0xff] %v3949_v1  ;;  %v3957_v50 = vor.u32 %v2726_v37, %v2240_v27  ;;  %v3972_v27 = vor.u32 %v2722_v41, %v2206_v40  ;;  %v2843_v42 = vld [vmem:[%s3483_s10 + $0x3f4] sm:$0xf0]  ;;  %v2775_v37 = vld [vmem:[%s3483_s10 + $0x1dc] sm:$0xf] }
  0x9f   : > { %1347 = vmatpush.bf16.msra.mxu0 %v3929_v19  ;;  %1373 = vmatpush.bf16.msra.mxu2 %v3935_v32  ;;  %4551 = vst [vmem:[#allocation79_spill] sm:$0xff] %v3955_v48  ;;  %v2786_v19 = vld [vmem:[%s3483_s10 + $0x22c] sm:$0xf0]  ;;  %v2438_v32 = vld [vmem:[%s3483_s10 + $0x1d8] sm:$0xf] }
  0xa0   : > { %4552 = vst [vmem:[#allocation80_spill] sm:$0xff] %v3957_v50  ;;  %v3979_v5 = vor.u32 %v2786_v19, %v2462_v54  ;;  %v2696_v2 = vld [vmem:[%s3483_s10 + $0x3f8] sm:$0xf0]  ;;  %v3988_v41 = vor.u32 %v2779_v12, %v2438_v32  ;;  %v2771_v54 = vld [vmem:[%s3483_s10 + $0x1b4] sm:$0xf0] }
  0xa1   : > { %1360 = vmatpush.bf16.msra.mxu1 %v3933_v55  ;;  %1386 = vmatpush.bf16.msra.mxu3 %v3941_v25  ;;  %4553 = vst [vmem:[#allocation81_spill] sm:$0xff] %v3963_v33  ;;  %v2782_v55 = vld [vmem:[%s3483_s10 + $0x214] sm:$0xf]  ;;  %v2440_v25 = vld [vmem:[%s3483_s10 + $0x1f8] sm:$0xf0] }
  0xa2   : > { %4554 = vst [vmem:[#allocation82_spill] sm:$0xff] %v3981_v49  ;;  %v3986_v40 = vor.u32 %v2782_v55, %v2464_v31  ;;  %v3992_v0 = vor.u32 %v2775_v37, %v2440_v25  ;;  %v2662_v19 = vld [vmem:[%s3483_s10 + $0x398] sm:$0xf]  ;;  %v2408_v31 = vld [vmem:[%s3483_s10 + $0x1b8] sm:$0xf0] }
  0xa3   : > { %1348 = vmatpush.bf16.msra.mxu0 %v3949_v1  ;;  %1374 = vmatpush.bf16.msra.mxu2 %v3957_v50  ;;  %v2839_v1 = vld [vmem:[%s3483_s10 + $0x3dc] sm:$0xf]  ;;  %4556 = vst [vmem:[#allocation84_spill] sm:$0xff] %v3988_v41  ;;  %v2406_v50 = vld [vmem:[%s3483_s10 + $0x198] sm:$0xf] }
  0xa4   : > { %4555 = vst [vmem:[#allocation83_spill] sm:$0xff] %v3986_v40  ;;  %v3998_v11 = vor.u32 %v2839_v1, %v2696_v2  ;;  %v2835_v43 = vld [vmem:[%s3483_s10 + $0x3b4] sm:$0xf0]  ;;  %v2831_v12 = vld [vmem:[%s3483_s10 + $0x39c] sm:$0xf]  ;;  %v4009_v2 = vor.u32 %v2771_v54, %v2406_v50 }
  0xa5   : > { %1361 = vmatpush.bf16.msra.mxu1 %v3955_v48  ;;  %1387 = vmatpush.bf16.msra.mxu3 %v3963_v33  ;;  %v3990_v48 = vor.u32 %v2843_v42, %v2694_v38  ;;  %4558 = vst [vmem:[#allocation86_spill] sm:$0xff] %v3992_v0  ;;  %v2767_v33 = vld [vmem:[%s3483_s10 + $0x19c] sm:$0xf]  ;;  %v4013_v55 = vor.u32 %v2835_v43, %v2662_v19  ;;  %v2374_v1 = vld [vmem:[%s3483_s10 + $0x158] sm:$0xf] }
  0xa6   : > { %4559 = vst [vmem:[#allocation87_spill] sm:$0xff] %v3998_v11  ;;  %v2664_v25 = vld [vmem:[%s3483_s10 + $0x3b8] sm:$0xf0]  ;;  %v4015_v32 = vor.u32 %v2767_v33, %v2408_v31  ;;  %v2763_v38 = vld [vmem:[%s3483_s10 + $0x174] sm:$0xf0] }
  0xa7   : > { %4557 = vst [vmem:[#allocation85_spill] sm:$0xff] %v3990_v48  ;;  %1349 = vmatpush.bf16.msra.mxu0 %v3972_v27  ;;  %1375 = vmatpush.bf16.msra.mxu2 %v3981_v49  ;;  %v2630_v42 = vld [vmem:[%s3483_s10 + $0x358] sm:$0xf]  ;;  %v4021_v37 = vor.u32 %v2831_v12, %v2664_v25  ;;  %v2759_v50 = vld [vmem:[%s3483_s10 + $0x15c] sm:$0xf]  ;;  %v4032_v33 = vor.u32 %v2763_v38, %v2374_v1 }
  0xa8   : > { %4560 = vst [vmem:[#allocation88_spill] sm:$0xff] %v4009_v2  ;;  %v2376_v54 = vld [vmem:[%s3483_s10 + $0x178] sm:$0xf0]  ;;  %v2342_v12 = vld [vmem:[%s3483_s10 + $0x118] sm:$0xf] }
  0xa9   : > { %1362 = vmatpush.bf16.msra.mxu1 %v3979_v5  ;;  %1388 = vmatpush.bf16.msra.mxu3 %v3986_v40  ;;  %4561 = vst [vmem:[#allocation89_spill] sm:$0xff] %v4013_v55  ;;  %v2632_v19 = vld [vmem:[%s3483_s10 + $0x378] sm:$0xf0]  ;;  %v4039_v31 = vor.u32 %v2759_v50, %v2376_v54  ;;  %v2755_v25 = vld [vmem:[%s3483_s10 + $0x134] sm:$0xf0] }
  0xaa   : > { %4562 = vst [vmem:[#allocation90_spill] sm:$0xff] %v4015_v32  ;;  %1376 = vmatmul.bf16.vlgmr.msra.gmra.mxu2 %v3716_v14  ;;  %1350 = vmatmul.bf16.vlgmr.msra.gmra.mxu0 %v3716_v14  ;;  %v2819_v38 = vld [vmem:[%s3483_s10 + $0x334] sm:$0xf0]  ;;  %v4053_v50 = vor.u32 %v2755_v25, %v2342_v12  ;;  %v2743_v25 = vld [vmem:[%s3483_s10 + $0xdc] sm:$0xf] }
  0xab   : > { %1394 = vmatpush.bf16.msrb.mxu0 %v3988_v41  ;;  %1420 = vmatpush.bf16.msrb.mxu2 %v3992_v0  ;;  %4563 = vst [vmem:[#allocation91_spill] sm:$0xff] %v4021_v37  ;;  %v2827_v41 = vld [vmem:[%s3483_s10 + $0x374] sm:$0xf0]  ;;  %v2823_v0 = vld [vmem:[%s3483_s10 + $0x35c] sm:$0xf] }
  0xac   : > { %1389 = vmatmul.bf16.vlgmr.msra.gmra.mxu3 %v3718_v16  ;;  %4564 = vst [vmem:[#allocation92_spill] sm:$0xff] %v4032_v33  ;;  %1363 = vmatmul.bf16.vlgmr.msra.gmra.mxu1 %v3718_v16  ;;  %v4037_v43 = vor.u32 %v2827_v41, %v2630_v42  ;;  %v4045_v1 = vor.u32 %v2823_v0, %v2632_v19  ;;  %v2815_v41 = vld [vmem:[%s3483_s10 + $0x31c] sm:$0xf]  ;;  %v2310_v19 = vld [vmem:[%s3483_s10 + $0xd8] sm:$0xf] }
  0xad   : > { %1407 = vmatpush.bf16.msrb.mxu1 %v3990_v48  ;;  %1433 = vmatpush.bf16.msrb.mxu3 %v3998_v11  ;;  %4566 = vst [vmem:[#allocation94_spill] sm:$0xff] %v4039_v31  ;;  %v2598_v11 = vld [vmem:[%s3483_s10 + $0x318] sm:$0xf]  ;;  %v2600_v42 = vld [vmem:[%s3483_s10 + $0x338] sm:$0xf0] }
  0xae   : > { %4565 = vst [vmem:[#allocation93_spill] sm:$0xff] %v4037_v43  ;;  %v4057_v0 = vor.u32 %v2819_v38, %v2598_v11  ;;  %v4065_v48 = vor.u32 %v2815_v41, %v2600_v42  ;;  %v2811_v12 = vld [vmem:[%s3483_s10 + $0x2f4] sm:$0xf0]  ;;  %v2807_v11 = vld [vmem:[%s3483_s10 + $0x2dc] sm:$0xf] }
  0xaf   : > { %1395 = vmatpush.bf16.msrb.mxu0 %v4009_v2  ;;  %1421 = vmatpush.bf16.msrb.mxu2 %v4015_v32  ;;  %4567 = vst [vmem:[#allocation95_spill] sm:$0xff] %v4045_v1  ;;  %v2751_v2 = vld [vmem:[%s3483_s10 + $0x11c] sm:$0xf]  ;;  %v2566_v32 = vld [vmem:[%s3483_s10 + $0x2d8] sm:$0xf] }
  0xb0   : > { %4568 = vst [vmem:[#allocation96_spill] sm:$0xff] %v4053_v50  ;;  %v4077_v38 = vor.u32 %v2811_v12, %v2566_v32  ;;  %v2278_v42 = vld [vmem:[%s3483_s10 + $0x98] sm:$0xf]  ;;  %v2799_v32 = vld [vmem:[%s3483_s10 + $0x29c] sm:$0xf] }
  0xb1   : > { %1408 = vmatpush.bf16.msrb.mxu1 %v4013_v55  ;;  %1434 = vmatpush.bf16.msrb.mxu3 %v4021_v37  ;;  %v2344_v55 = vld [vmem:[%s3483_s10 + $0x138] sm:$0xf0]  ;;  %4569 = vst [vmem:[#allocation97_spill] sm:$0xff] %v4057_v0  ;;  %v2747_v37 = vld [vmem:[%s3483_s10 + $0xf4] sm:$0xf0] }
  0xb2   : > { %v4059_v54 = vor.u32 %v2751_v2, %v2344_v55  ;;  %4571 = vst [vmem:[#allocation99_spill] sm:$0xff] %v4065_v48  ;;  %v2568_v2 = vld [vmem:[%s3483_s10 + $0x2f8] sm:$0xf0]  ;;  %v4073_v55 = vor.u32 %v2747_v37, %v2310_v19  ;;  %v2803_v37 = vld [vmem:[%s3483_s10 + $0x2b4] sm:$0xf0] }
  0xb3   : > { %1396 = vmatpush.bf16.msrb.mxu0 %v4032_v33  ;;  %1422 = vmatpush.bf16.msrb.mxu2 %v4039_v31  ;;  %4573 = vst [vmem:[#allocation101_spill] sm:$0xff] %v4077_v38  ;;  %v2534_v31 = vld [vmem:[%s3483_s10 + $0x298] sm:$0xf]  ;;  %v4085_v33 = vor.u32 %v2807_v11, %v2568_v2  ;;  %v2735_v19 = vld [vmem:[%s3483_s10 + $0x9c] sm:$0xf] }
  0xb4   : > { %4570 = vst [vmem:[#allocation98_spill] sm:$0xff] %v4059_v54  ;;  %v2246_v2 = vld [vmem:[%s3483_s10 + $0x58] sm:$0xf]  ;;  %v2719_v49 = vld [vmem:[%s3483_s10 + $0x1c] sm:$0xf] }
  0xb5   : > { %1409 = vmatpush.bf16.msrb.mxu1 %v4037_v43  ;;  %1435 = vmatpush.bf16.msrb.mxu3 %v4045_v1  ;;  %v2312_v43 = vld [vmem:[%s3483_s10 + $0xf8] sm:$0xf0]  ;;  %4572 = vst [vmem:[#allocation100_spill] sm:$0xff] %v4073_v55  ;;  %v2739_v1 = vld [vmem:[%s3483_s10 + $0xb4] sm:$0xf0] }
  0xb6   : > { %v4079_v41 = vor.u32 %v2743_v25, %v2312_v43  ;;  %4575 = vst [vmem:[#allocation103_spill] sm:$0xff] %v4085_v33  ;;  %v2536_v43 = vld [vmem:[%s3483_s10 + $0x2b8] sm:$0xf0]  ;;  %v4093_v12 = vor.u32 %v2739_v1, %v2278_v42  ;;  %v4097_v25 = vor.u32 %v2803_v37, %v2534_v31  ;;  %v2795_v1 = vld [vmem:[%s3483_s10 + $0x274] sm:$0xf0] }
  0xb7   : > { %1397 = vmatpush.bf16.msrb.mxu0 %v4053_v50  ;;  %1423 = vmatpush.bf16.msrb.mxu2 %v4059_v54  ;;  %v2502_v54 = vld [vmem:[%s3483_s10 + $0x258] sm:$0xf]  ;;  %v4105_v50 = vor.u32 %v2799_v32, %v2536_v43  ;;  %v2727_v42 = vld [vmem:[%s3483_s10 + $0x5c] sm:$0xf] }
  0xb8   : > { %4574 = vst [vmem:[#allocation102_spill] sm:$0xff] %v4079_v41  ;;  %v2791_v31 = vld [vmem:[%s3483_s10 + $0x25c] sm:$0xf]  ;;  %v2214_v43 = vld [vmem:[%s3483_s10 + $0x18] sm:$0xf] }
  0xb9   : > { %1410 = vmatpush.bf16.msrb.mxu1 %v4057_v0  ;;  %1436 = vmatpush.bf16.msrb.mxu3 %v4065_v48  ;;  %v2280_v0 = vld [vmem:[%s3483_s10 + $0xb8] sm:$0xf0]  ;;  %4576 = vst [vmem:[#allocation104_spill] sm:$0xff] %v4093_v12  ;;  %v2731_v48 = vld [vmem:[%s3483_s10 + $0x74] sm:$0xf0] }
  0xba   : > { %4577 = vst [vmem:[#allocation105_spill] sm:$0xff] %v4097_v25  ;;  %v4099_v11 = vor.u32 %v2735_v19, %v2280_v0  ;;  %v2504_v0 = vld [vmem:[%s3483_s10 + $0x278] sm:$0xf0]  ;;  %v4113_v37 = vor.u32 %v2731_v48, %v2246_v2  ;;  %v4117_v19 = vor.u32 %v2795_v1, %v2502_v54  ;;  %v2787_v40 = vld [vmem:[%s3483_s10 + $0x234] sm:$0xf0] }
  0xbb   : > { %1398 = vmatpush.bf16.msrb.mxu0 %v4073_v55  ;;  %1424 = vmatpush.bf16.msrb.mxu2 %v4079_v41  ;;  %v2470_v41 = vld [vmem:[%s3483_s10 + $0x218] sm:$0xf]  ;;  %v4125_v55 = vor.u32 %v2791_v31, %v2504_v0  ;;  %v2783_v48 = vld [vmem:[%s3483_s10 + $0x21c] sm:$0xf] }
  0xbc   : > { %v2472_v2 = vld [vmem:[%s3483_s10 + $0x238] sm:$0xf0]  ;;  %v4137_v54 = vor.u32 %v2787_v40, %v2470_v41 }
  0xbd   : > { %1411 = vmatpush.bf16.msrb.mxu1 %v4077_v38  ;;  %1437 = vmatpush.bf16.msrb.mxu3 %v4085_v33  ;;  %v2248_v38 = vld [vmem:[%s3483_s10 + $0x78] sm:$0xf0]  ;;  %v2723_v33 = vld [vmem:[%s3483_s10 + $0x34] sm:$0xf0]  ;;  %v4142_v1 = vor.u32 %v2783_v48, %v2472_v2  ;;  %v4615_v2 = vld [vmem:[#allocation66_spill] sm:$0xff] }
  0xbe   : > { %v4119_v32 = vor.u32 %v2727_v42, %v2248_v38  ;;  %v4610_v40 = vld [vmem:[#allocation61_spill] sm:$0xff]  ;;  %v4613_v42 = vld [vmem:[#allocation64_spill] sm:$0xff] }
  0xbf   : > { %1399 = vmatpush.bf16.msrb.mxu0 %v4093_v12  ;;  %1425 = vmatpush.bf16.msrb.mxu2 %v4099_v11  ;;  %v2216_v12 = vld [vmem:[%s3483_s10 + $0x38] sm:$0xf0] }
  0xc0   : > { %v4139_v38 = vor.u32 %v2719_v49, %v2216_v12  ;;  %v4609_v49 = vld [vmem:[#allocation60_spill] sm:$0xff]  ;;  %v4612_v12 = vld [vmem:[#allocation63_spill] sm:$0xff]  ;;  %v4614_v0 = vld [vmem:[#allocation65_spill] sm:$0xff] }
  0xc1   : > { %1412 = vmatpush.bf16.msrb.mxu1 %v4097_v25  ;;  %1438 = vmatpush.bf16.msrb.mxu3 %v4105_v50  ;;  %v4133_v25 = vor.u32 %v2723_v33, %v2214_v43  ;;  %v4611_v33 = vld [vmem:[#allocation62_spill] sm:$0xff] }
  0xc3   : > { %1400 = vmatpush.bf16.msrb.mxu0 %v4113_v37  ;;  %1426 = vmatpush.bf16.msrb.mxu2 %v4119_v32 }
  0xc5   : > { %1413 = vmatpush.bf16.msrb.mxu1 %v4117_v19  ;;  %1439 = vmatpush.bf16.msrb.mxu3 %v4125_v55 }
  0xc7   : > { %1401 = vmatpush.bf16.msrb.mxu0 %v4133_v25  ;;  %1427 = vmatpush.bf16.msrb.mxu2 %v4139_v38 }
  0xc9   : > { %1414 = vmatpush.bf16.msrb.mxu1 %v4137_v54  ;;  %1440 = vmatpush.bf16.msrb.mxu3 %v4142_v1 }
  0xca   : > { %1428 = vmatmul.bf16.vlgmr.msrb.gmra.mxu2 %v3716_v14  ;;  %1402 = vmatmul.bf16.vlgmr.msrb.gmra.mxu0 %v3716_v14  ;;  %v4607_v14 = vld [vmem:[#allocation58_spill] sm:$0xff] }
  0xcb   : > { %1484 = vmatpush.bf16.msra.mxu0 %v3493_v4  ;;  %1510 = vmatpush.bf16.msra.mxu2 %v3500_v9  ;;  %v4183_v4 = vld [vmem:[#allocation1] sm:$0xff]  ;;  %v4578_v9 = vld [vmem:[#allocation29_spill] sm:$0xff] }
  0xcc   : > { %1441 = vmatmul.bf16.vlgmr.msrb.gmra.mxu3 %v3718_v16  ;;  %1415 = vmatmul.bf16.vlgmr.msrb.gmra.mxu1 %v3718_v16  ;;  %v4608_v16 = vld [vmem:[#allocation59_spill] sm:$0xff] }
  0xcd   : > { %1497 = vmatpush.bf16.msra.mxu1 %v3498_v8  ;;  %1523 = vmatpush.bf16.msra.mxu3 %v3506_v13  ;;  %v4187_v8 = vld [vmem:[#allocation1 + $0x9] sm:$0xff]  ;;  %v4579_v13 = vld [vmem:[#allocation30_spill] sm:$0xff] }
  0xcf   : > { %1485 = vmatpush.bf16.msra.mxu0 %v3513_v17  ;;  %1511 = vmatpush.bf16.msra.mxu2 %v3521_v22  ;;  %v4580_v17 = vld [vmem:[#allocation31_spill] sm:$0xff]  ;;  %v4582_v22 = vld [vmem:[#allocation33_spill] sm:$0xff] }
  0xd1   : > { %1498 = vmatpush.bf16.msra.mxu1 %v3515_v18  ;;  %1524 = vmatpush.bf16.msra.mxu3 %v3526_v26  ;;  %v4581_v18 = vld [vmem:[#allocation32_spill] sm:$0xff]  ;;  %v4583_v26 = vld [vmem:[#allocation34_spill] sm:$0xff] }
  0xd3   : > { %1486 = vmatpush.bf16.msra.mxu0 %v3532_v30  ;;  %1512 = vmatpush.bf16.msra.mxu2 %v3541_v35  ;;  %v4584_v30 = vld [vmem:[#allocation35_spill] sm:$0xff]  ;;  %v4586_v35 = vld [vmem:[#allocation37_spill] sm:$0xff] }
  0xd5   : > { %1499 = vmatpush.bf16.msra.mxu1 %v3539_v34  ;;  %1525 = vmatpush.bf16.msra.mxu3 %v3547_v39  ;;  %v4585_v34 = vld [vmem:[#allocation36_spill] sm:$0xff] }
  0xd7   : > { %1487 = vmatpush.bf16.msra.mxu0 %v3555_v45  ;;  %1513 = vmatpush.bf16.msra.mxu2 %v3561_v47  ;;  %v4587_v45 = vld [vmem:[#allocation38_spill] sm:$0xff]  ;;  %v4588_v47 = vld [vmem:[#allocation39_spill] sm:$0xff] }
  0xd9   : > { %1500 = vmatpush.bf16.msra.mxu1 %v3559_v46  ;;  %1526 = vmatpush.bf16.msra.mxu3 %v3567_v51  ;;  %v4589_v51 = vld [vmem:[#allocation40_spill] sm:$0xff] }
  0xdb   : > { %1488 = vmatpush.bf16.msra.mxu0 %v3575_v57  ;;  %1514 = vmatpush.bf16.msra.mxu2 %v3581_v59  ;;  %v4590_v57 = vld [vmem:[#allocation41_spill] sm:$0xff]  ;;  %v4591_v59 = vld [vmem:[#allocation42_spill] sm:$0xff] }
  0xdd   : > { %1501 = vmatpush.bf16.msra.mxu1 %v3579_v58  ;;  %1527 = vmatpush.bf16.msra.mxu3 %v3587_v63  ;;  %v4592_v63 = vld [vmem:[#allocation43_spill] sm:$0xff] }
  0xdf   : > { %1489 = vmatpush.bf16.msra.mxu0 %v3595_v6  ;;  %1515 = vmatpush.bf16.msra.mxu2 %v3601_v10  ;;  %v4593_v6 = vld [vmem:[#allocation44_spill] sm:$0xff] }
  0xe1   : > { %1502 = vmatpush.bf16.msra.mxu1 %v3599_v7  ;;  %1528 = vmatpush.bf16.msra.mxu3 %v3607_v15  ;;  %v4594_v7 = vld [vmem:[#allocation45_spill] sm:$0xff] }
  0xe3   : > { %1490 = vmatpush.bf16.msra.mxu0 %v3615_v24  ;;  %1516 = vmatpush.bf16.msra.mxu2 %v3623_v29  ;;  %v4595_v24 = vld [vmem:[#allocation46_spill] sm:$0xff]  ;;  %v4596_v29 = vld [vmem:[#allocation47_spill] sm:$0xff] }
  0xe5   : > { %1503 = vmatpush.bf16.msra.mxu1 %v3621_v28  ;;  %1529 = vmatpush.bf16.msra.mxu3 %v3629_v36  ;;  %v4597_v36 = vld [vmem:[#allocation48_spill] sm:$0xff] }
  0xe7   : > { %1491 = vmatpush.bf16.msra.mxu0 %v3638_v44  ;;  %1517 = vmatpush.bf16.msra.mxu2 %v3647_v53  ;;  %v4598_v44 = vld [vmem:[#allocation49_spill] sm:$0xff]  ;;  %v4599_v53 = vld [vmem:[#allocation50_spill] sm:$0xff] }
  0xe9   : > { %1504 = vmatpush.bf16.msra.mxu1 %v3645_v52  ;;  %1530 = vmatpush.bf16.msra.mxu3 %v3652_v56  ;;  %v4600_v56 = vld [vmem:[#allocation51_spill] sm:$0xff] }
  0xea   : > { %1518 = vmatmul.bf16.vlgmr.msra.gmra.mxu2 %v4183_v4  ;;  %1492 = vmatmul.bf16.vlgmr.msra.gmra.mxu0 %v4183_v4 }
  0xeb   : > { %1536 = vmatpush.bf16.msrb.mxu0 %v3654_v60  ;;  %1562 = vmatpush.bf16.msrb.mxu2 %v3658_v62  ;;  %v4601_v60 = vld [vmem:[#allocation52_spill] sm:$0xff]  ;;  %v4603_v62 = vld [vmem:[#allocation54_spill] sm:$0xff] }
  0xec   : > { %1531 = vmatmul.bf16.vlgmr.msra.gmra.mxu3 %v4187_v8  ;;  %1505 = vmatmul.bf16.vlgmr.msra.gmra.mxu1 %v4187_v8 }
  0xed   : > { %1549 = vmatpush.bf16.msrb.mxu1 %v3656_v61  ;;  %1575 = vmatpush.bf16.msrb.mxu3 %v3664_v3  ;;  %v1247_v39 = vpop.f32.mrf.mxu0  ;;  %v4602_v61 = vld [vmem:[#allocation53_spill] sm:$0xff] }
  0xef   : > { %1537 = vmatpush.bf16.msrb.mxu0 %v3676_v20  ;;  %1563 = vmatpush.bf16.msrb.mxu2 %v3682_v23  ;;  %v1260_v46 = vpop.f32.mrf.mxu1  ;;  %v4604_v20 = vld [vmem:[#allocation55_spill] sm:$0xff]  ;;  %v4606_v23 = vld [vmem:[#allocation57_spill] sm:$0xff] }
  0xf1   : > { %1550 = vmatpush.bf16.msrb.mxu1 %v3680_v21  ;;  %1576 = vmatpush.bf16.msrb.mxu3 %v4578_v9  ;;  %v4605_v21 = vld [vmem:[#allocation56_spill] sm:$0xff]  ;;  %v4616_v9 = vld [vmem:[#allocation67_spill] sm:$0xff] }
  0xf3   : > { %1538 = vmatpush.bf16.msrb.mxu0 %v4579_v13  ;;  %1564 = vmatpush.bf16.msrb.mxu2 %v4581_v18  ;;  %v1273_v58 = vpop.f32.mrf.mxu2  ;;  %v4617_v13 = vld [vmem:[#allocation68_spill] sm:$0xff]  ;;  %v4618_v18 = vld [vmem:[#allocation69_spill] sm:$0xff] }
  0xf5   : > { %1551 = vmatpush.bf16.msrb.mxu1 %v4580_v17  ;;  %1577 = vmatpush.bf16.msrb.mxu3 %v4582_v22  ;;  %v1286_v10 = vpop.f32.mrf.mxu3  ;;  %v1249_v15 = vpop.f32.mrf.mxu0 }
  0xf6   : > { %v1287_v43 = vadd.f32 %v1286_v10, %v1273_v58  ;;  %v4623_v10 = vld [vmem:[#allocation74_spill] sm:$0xff] }
  0xf7   : > { %1539 = vmatpush.bf16.msrb.mxu0 %v4583_v26  ;;  %1565 = vmatpush.bf16.msrb.mxu2 %v4585_v34  ;;  %v1262_v28 = vpop.f32.mrf.mxu1  ;;  %v1261_v26 = vadd.f32 %v1260_v46, %v1247_v39 }
  0xf8   : > { %v4625_v28 = vld [vmem:[#allocation76_spill] sm:$0xff] }
  0xf9   : > { %1552 = vmatpush.bf16.msrb.mxu1 %v4584_v30  ;;  %1578 = vmatpush.bf16.msrb.mxu3 %v4586_v35  ;;  %v1454_v30 = vrot.slane %v1287_v43, 6  ;;  %v4647_v43 = vld [vmem:[#allocation98_spill] sm:$0xff] }
  0xfb   : > { %1540 = vmatpush.bf16.msrb.mxu0 %v4587_v45  ;;  %1566 = vmatpush.bf16.msrb.mxu2 %v4589_v51  ;;  %v1275_v52 = vpop.f32.mrf.mxu2  ;;  %v4619_v45 = vld [vmem:[#allocation70_spill] sm:$0xff]  ;;  %v4620_v51 = vld [vmem:[#allocation71_spill] sm:$0xff]  ;;  %v1461_v39 = vsel %vm1460_vm0, %v1261_v26, %v1454_v30 }
  0xfc   : > { %v4627_v52 = vld [vmem:[#allocation78_spill] sm:$0xff]  ;;  %v4652_v30 = vld [vmem:[#allocation103_spill] sm:$0xff] }
  0xfd   : > { %1553 = vmatpush.bf16.msrb.mxu1 %v4588_v47  ;;  %1579 = vmatpush.bf16.msrb.mxu3 %v4590_v57  ;;  %v1288_v3 = vpop.f32.mrf.mxu3  ;;  %v4621_v57 = vld [vmem:[#allocation72_spill] sm:$0xff] }
  0xfe   : > { %v4633_v3 = vld [vmem:[#allocation84_spill] sm:$0xff] }
  0xff   : > { %1541 = vmatpush.bf16.msrb.mxu0 %v4591_v59  ;;  %1567 = vmatpush.bf16.msrb.mxu2 %v4593_v6  ;;  %v589_v6 = vld [vmem:[#allocation2] sm:$0xff] }
 0x101   : > { %1554 = vmatpush.bf16.msrb.mxu1 %v4592_v63  ;;  %1580 = vmatpush.bf16.msrb.mxu3 %v4594_v7  ;;  %v4622_v63 = vld [vmem:[#allocation73_spill] sm:$0xff] }
 0x103   : > { %1542 = vmatpush.bf16.msrb.mxu0 %v4595_v24  ;;  %1568 = vmatpush.bf16.msrb.mxu2 %v4597_v36  ;;  %v4624_v24 = vld [vmem:[#allocation75_spill] sm:$0xff]  ;;  %v4626_v36 = vld [vmem:[#allocation77_spill] sm:$0xff] }
 0x105   : > { %1555 = vmatpush.bf16.msrb.mxu1 %v4596_v29  ;;  %1581 = vmatpush.bf16.msrb.mxu3 %v4598_v44 }
 0x107   : > { %1543 = vmatpush.bf16.msrb.mxu0 %v4599_v53  ;;  %1569 = vmatpush.bf16.msrb.mxu2 %v4601_v60  ;;  %v1299_v41 = vpop.f32.mrf.mxu0  ;;  %v4628_v53 = vld [vmem:[#allocation79_spill] sm:$0xff]  ;;  %v4630_v60 = vld [vmem:[#allocation81_spill] sm:$0xff] }
 0x109   : > { %1556 = vmatpush.bf16.msrb.mxu1 %v4600_v56  ;;  %1582 = vmatpush.bf16.msrb.mxu3 %v4602_v61  ;;  %v1312_v31 = vpop.f32.mrf.mxu1  ;;  %v4629_v56 = vld [vmem:[#allocation80_spill] sm:$0xff]  ;;  %v4631_v61 = vld [vmem:[#allocation82_spill] sm:$0xff] }
 0x10a   : > { %1570 = vmatmul.bf16.vlgmr.msrb.gmra.mxu2 %v4183_v4  ;;  %1544 = vmatmul.bf16.vlgmr.msrb.gmra.mxu0 %v4183_v4  ;;  %v1313_v48 = vadd.f32 %v1312_v31, %v1299_v41  ;;  %v4643_v41 = vld [vmem:[#allocation94_spill] sm:$0xff]  ;;  %v4645_v31 = vld [vmem:[#allocation96_spill] sm:$0xff] }
 0x10b   : > { %1588 = vmatpush.bf16.msra.mxu0 %v4603_v62  ;;  %1614 = vmatpush.bf16.msra.mxu2 %v4605_v21  ;;  %v4632_v62 = vld [vmem:[#allocation83_spill] sm:$0xff]  ;;  %v4635_v21 = vld [vmem:[#allocation86_spill] sm:$0xff] }
 0x10c   : > { %1583 = vmatmul.bf16.vlgmr.msrb.gmra.mxu3 %v4187_v8  ;;  %1557 = vmatmul.bf16.vlgmr.msrb.gmra.mxu1 %v4187_v8  ;;  %v1455_v34 = vrot.slane %v1313_v48, 4 }
 0x10d   : > { %1601 = vmatpush.bf16.msra.mxu1 %v4604_v20  ;;  %1627 = vmatpush.bf16.msra.mxu3 %v4606_v23  ;;  %v1325_v17 = vpop.f32.mrf.mxu2  ;;  %v4634_v20 = vld [vmem:[#allocation85_spill] sm:$0xff]  ;;  %v4636_v23 = vld [vmem:[#allocation87_spill] sm:$0xff] }
 0x10f   : > { %1589 = vmatpush.bf16.msra.mxu0 %v4607_v14  ;;  %1615 = vmatpush.bf16.msra.mxu2 %v4609_v49  ;;  %v1338_v22 = vpop.f32.mrf.mxu3  ;;  %v1301_v47 = vpop.f32.mrf.mxu0  ;;  %v4639_v14 = vld [vmem:[#allocation90_spill] sm:$0xff]  ;;  %v4641_v49 = vld [vmem:[#allocation92_spill] sm:$0xff] }
 0x110   : > { %v1339_v35 = vadd.f32 %v1338_v22, %v1325_v17  ;;  %v4651_v22 = vld [vmem:[#allocation102_spill] sm:$0xff] }
 0x111   : > { %1602 = vmatpush.bf16.msra.mxu1 %v4608_v16  ;;  %1628 = vmatpush.bf16.msra.mxu3 %v4610_v40  ;;  %v1314_v59 = vpop.f32.mrf.mxu1  ;;  %v4640_v16 = vld [vmem:[#allocation91_spill] sm:$0xff] }
 0x112   : > { %v1456_v58 = vrot.slane %v1339_v35, 2  ;;  %v4654_v35 = vld [vmem:[#allocation105_spill] sm:$0xff] }
 0x113   : > { %1590 = vmatpush.bf16.msra.mxu0 %v4611_v33  ;;  %1616 = vmatpush.bf16.msra.mxu2 %v4613_v42  ;;  %v4642_v33 = vld [vmem:[#allocation93_spill] sm:$0xff]  ;;  %v4644_v42 = vld [vmem:[#allocation95_spill] sm:$0xff] }
 0x114   : > { %v1463_v46 = vsel %vm1462_vm1, %v1455_v34, %v1456_v58  ;;  %v4653_v34 = vld [vmem:[#allocation104_spill] sm:$0xff]  ;;  %v590_v59 = vld [vmem:[#allocation2 + $0x8] sm:$0xff] }
 0x115   : > { %1603 = vmatpush.bf16.msra.mxu1 %v4612_v12  ;;  %1629 = vmatpush.bf16.msra.mxu3 %v4614_v0  ;;  %v1465_v7 = vsel %vm1464_vm2, %v1461_v39, %v1463_v46  ;;  %v1327_v29 = vpop.f32.mrf.mxu2  ;;  %v4646_v0 = vld [vmem:[#allocation97_spill] sm:$0xff] }
 0x116   : > { %v1471_v15 = vadd.f32 %v1465_v7, %v589_v6 }
 0x117   : > { %1591 = vmatpush.bf16.msra.mxu0 %v4615_v2  ;;  %1617 = vmatpush.bf16.msra.mxu2 %v4617_v13  ;;  %v1340_v44 = vpop.f32.mrf.mxu3  ;;  %v4648_v2 = vld [vmem:[#allocation99_spill] sm:$0xff]  ;;  %v4649_v13 = vld [vmem:[#allocation100_spill] sm:$0xff] }
 0x118   : > { %1473 = vst [vmem:[#allocation2] sm:$0xff] %v1471_v15 }
 0x119   : > { %1604 = vmatpush.bf16.msra.mxu1 %v4616_v9  ;;  %1630 = vmatpush.bf16.msra.mxu3 %v4618_v18  ;;  %v4650_v18 = vld [vmem:[#allocation101_spill] sm:$0xff] }
 0x11b   : > { %1592 = vmatpush.bf16.msra.mxu0 %v4619_v45  ;;  %1618 = vmatpush.bf16.msra.mxu2 %v4621_v57 }
 0x11d   : > { %1605 = vmatpush.bf16.msra.mxu1 %v4620_v51  ;;  %1631 = vmatpush.bf16.msra.mxu3 %v4622_v63 }
 0x11f   : > { %1593 = vmatpush.bf16.msra.mxu0 %v4623_v10  ;;  %1619 = vmatpush.bf16.msra.mxu2 %v4625_v28 }
 0x121   : > { %1606 = vmatpush.bf16.msra.mxu1 %v4624_v24  ;;  %1632 = vmatpush.bf16.msra.mxu3 %v4626_v36 }
 0x123   : > { %1594 = vmatpush.bf16.msra.mxu0 %v4627_v52  ;;  %1620 = vmatpush.bf16.msra.mxu2 %v4629_v56 }
 0x125   : > { %1607 = vmatpush.bf16.msra.mxu1 %v4628_v53  ;;  %1633 = vmatpush.bf16.msra.mxu3 %v4630_v60 }
 0x127   : > { %1595 = vmatpush.bf16.msra.mxu0 %v3972_v27  ;;  %1621 = vmatpush.bf16.msra.mxu2 %v4631_v61  ;;  %v4637_v27 = vld [vmem:[#allocation88_spill] sm:$0xff]  ;;  %v1351_v40 = vpop.f32.mrf.mxu0 }
 0x129   : > { %1608 = vmatpush.bf16.msra.mxu1 %v3979_v5  ;;  %1634 = vmatpush.bf16.msra.mxu3 %v4632_v62  ;;  %v4638_v5 = vld [vmem:[#allocation89_spill] sm:$0xff]  ;;  %v1364_v12 = vpop.f32.mrf.mxu1 }
 0x12a   : > { %1622 = vmatmul.bf16.vlgmr.msra.gmra.mxu2 %v4183_v4  ;;  %1596 = vmatmul.bf16.vlgmr.msra.gmra.mxu0 %v4183_v4 }
 0x12b   : > { %1640 = vmatpush.bf16.msrb.mxu0 %v4633_v3  ;;  %1666 = vmatpush.bf16.msrb.mxu2 %v4635_v21 }
 0x12c   : > { %1635 = vmatmul.bf16.vlgmr.msra.gmra.mxu3 %v4187_v8  ;;  %1609 = vmatmul.bf16.vlgmr.msra.gmra.mxu1 %v4187_v8 }
 0x12d   : > { %1653 = vmatpush.bf16.msrb.mxu1 %v4634_v20  ;;  %1679 = vmatpush.bf16.msrb.mxu3 %v4636_v23  ;;  %v1377_v48 = vpop.f32.mrf.mxu2 }
 0x12f   : > { %1641 = vmatpush.bf16.msrb.mxu0 %v4637_v27  ;;  %1667 = vmatpush.bf16.msrb.mxu2 %v4639_v14  ;;  %v1390_v9 = vpop.f32.mrf.mxu3  ;;  %v1353_v17 = vpop.f32.mrf.mxu0 }
 0x131   : > { %1654 = vmatpush.bf16.msrb.mxu1 %v4638_v5  ;;  %1680 = vmatpush.bf16.msrb.mxu3 %v4640_v16  ;;  %v1366_v26 = vpop.f32.mrf.mxu1  ;;  %v1475_v16 = vld [vmem:[#allocation3 + $0x8] sm:$0xff] }
 0x133   : > { %1642 = vmatpush.bf16.msrb.mxu0 %v4641_v49  ;;  %1668 = vmatpush.bf16.msrb.mxu2 %v4643_v41 }
 0x135   : > { %1655 = vmatpush.bf16.msrb.mxu1 %v4642_v33  ;;  %1681 = vmatpush.bf16.msrb.mxu3 %v4644_v42  ;;  %v1379_v45 = vpop.f32.mrf.mxu2 }
 0x137   : > { %1643 = vmatpush.bf16.msrb.mxu0 %v4645_v31  ;;  %1669 = vmatpush.bf16.msrb.mxu2 %v4647_v43  ;;  %v1392_v47 = vpop.f32.mrf.mxu3 }
 0x139   : > { %1656 = vmatpush.bf16.msrb.mxu1 %v4646_v0  ;;  %1682 = vmatpush.bf16.msrb.mxu3 %v4648_v2 }
 0x13b   : > { %1644 = vmatpush.bf16.msrb.mxu0 %v4649_v13  ;;  %1670 = vmatpush.bf16.msrb.mxu2 %v4651_v22 }
 0x13d   : > { %1657 = vmatpush.bf16.msrb.mxu1 %v4650_v18  ;;  %1683 = vmatpush.bf16.msrb.mxu3 %v4652_v30 }
 0x13f   : > { %1645 = vmatpush.bf16.msrb.mxu0 %v4653_v34  ;;  %1671 = vmatpush.bf16.msrb.mxu2 %v4099_v11 }
 0x141   : > { %1658 = vmatpush.bf16.msrb.mxu1 %v4654_v35  ;;  %1684 = vmatpush.bf16.msrb.mxu3 %v4105_v50 }
 0x143   : > { %1646 = vmatpush.bf16.msrb.mxu0 %v4113_v37  ;;  %1672 = vmatpush.bf16.msrb.mxu2 %v4119_v32  ;;  %v1391_v37 = vadd.f32 %v1390_v9, %v1377_v48  ;;  %v1365_v32 = vadd.f32 %v1364_v12, %v1351_v40 }
 0x145   : > { %1659 = vmatpush.bf16.msrb.mxu1 %v4117_v19  ;;  %1685 = vmatpush.bf16.msrb.mxu3 %v4125_v55 }
 0x147   : > { %1647 = vmatpush.bf16.msrb.mxu0 %v4133_v25  ;;  %1673 = vmatpush.bf16.msrb.mxu2 %v4139_v38  ;;  %v1403_v50 = vpop.f32.mrf.mxu0 }
 0x149   : > { %1660 = vmatpush.bf16.msrb.mxu1 %v4137_v54  ;;  %1686 = vmatpush.bf16.msrb.mxu3 %v4142_v1  ;;  %v1416_v11 = vpop.f32.mrf.mxu1  ;;  %v1457_v54 = vrot.slane %v1391_v37, 6 }
 0x14a   : > { %1648 = vmatmul.bf16.vlgmr.msrb.gmra.mxu0 %v4183_v4  ;;  %1674 = vmatmul.bf16.vlgmr.msrb.gmra.mxu2 %v4183_v4  ;;  %v1417_v55 = vadd.f32 %v1416_v11, %v1403_v50 }
 0x14b   : > { %v1466_v63 = vsel %vm1460_vm0, %v1365_v32, %v1457_v54 }
 0x14c   : > { %1661 = vmatmul.bf16.vlgmr.msrb.gmra.mxu1 %v4187_v8  ;;  %1687 = vmatmul.bf16.vlgmr.msrb.gmra.mxu3 %v4187_v8  ;;  %v1458_v51 = vrot.slane %v1417_v55, 4 }
 0x14d   : > { %v1429_v19 = vpop.f32.mrf.mxu2 }
 0x14f   : > { %v1442_v25 = vpop.f32.mrf.mxu3  ;;  %v1405_v57 = vpop.f32.mrf.mxu0 }
 0x150   : > { %v1443_v38 = vadd.f32 %v1442_v25, %v1429_v19  ;;  %v1476_v25 = vld [vmem:[#allocation3] sm:$0xff] }
 0x151   : > { %v1418_v58 = vpop.f32.mrf.mxu1 }
 0x152   : > { %v1459_v1 = vrot.slane %v1443_v38, 2 }
 0x154   : > { %v1467_v4 = vsel %vm1462_vm1, %v1458_v51, %v1459_v1 }
 0x155   : > { %v1468_v8 = vsel %vm1464_vm2, %v1466_v63, %v1467_v4  ;;  %v1431_v39 = vpop.f32.mrf.mxu2 }
 0x156   : > { %v1472_v6 = vadd.f32 %v1468_v8, %v590_v59 }
 0x157   : > { %v1444_v46 = vpop.f32.mrf.mxu3 }
 0x158   : > { %1474 = vst [vmem:[#allocation2 + $0x8] sm:$0xff] %v1472_v6 }
 0x167   : > { %v1493_v7 = vpop.f32.mrf.mxu0 }
 0x169   : > { %v1506_v10 = vpop.f32.mrf.mxu1 }
 0x16a   : > { %v1507_v3 = vadd.f32 %v1506_v10, %v1493_v7 }
 0x16d   : > { %v1519_v15 = vpop.f32.mrf.mxu2 }
 0x16f   : > { %v1532_v24 = vpop.f32.mrf.mxu3  ;;  %v1495_v28 = vpop.f32.mrf.mxu0 }
 0x170   : > { %v1533_v56 = vadd.f32 %v1532_v24, %v1519_v15 }
 0x171   : > { %v1508_v29 = vpop.f32.mrf.mxu1 }
 0x172   : > { %v1700_v20 = vrot.slane %v1533_v56, 6 }
 0x174   : > { %v1706_v49 = vsel %vm1460_vm0, %v1507_v3, %v1700_v20 }
 0x175   : > { %v1521_v36 = vpop.f32.mrf.mxu2 }
 0x177   : > { %v1534_v44 = vpop.f32.mrf.mxu3 }
 0x187   : > { %v1545_v52 = vpop.f32.mrf.mxu0 }
 0x189   : > { %v1558_v53 = vpop.f32.mrf.mxu1 }
 0x18a   : > { %v1559_v60 = vadd.f32 %v1558_v53, %v1545_v52 }
 0x18c   : > { %v1701_v21 = vrot.slane %v1559_v60, 4 }
 0x18d   : > { %v1571_v61 = vpop.f32.mrf.mxu2 }
 0x18f   : > { %v1584_v62 = vpop.f32.mrf.mxu3  ;;  %v1547_v27 = vpop.f32.mrf.mxu0 }
 0x190   : > { %v1585_v23 = vadd.f32 %v1584_v62, %v1571_v61 }
 0x191   : > { %v1560_v14 = vpop.f32.mrf.mxu1 }
 0x192   : > { %v1702_v5 = vrot.slane %v1585_v23, 2 }
 0x194   : > { %v1707_v40 = vsel %vm1462_vm1, %v1701_v21, %v1702_v5 }
 0x195   : > { %v1708_v33 = vsel %vm1464_vm2, %v1706_v49, %v1707_v40  ;;  %v1573_v12 = vpop.f32.mrf.mxu2 }
 0x196   : > { %v1714_v41 = vadd.f32 %v1708_v33, %v1475_v16 }
 0x197   : > { %v1586_v42 = vpop.f32.mrf.mxu3 }
 0x198   : > { %1716 = vst [vmem:[#allocation3 + $0x8] sm:$0xff] %v1714_v41 }
 0x1a7   : > { %v1597_v31 = vpop.f32.mrf.mxu0 }
 0x1a9   : > { %v1610_v0 = vpop.f32.mrf.mxu1 }
 0x1aa   : > { %v1611_v47 = vadd.f32 %v1610_v0, %v1597_v31 }
 0x1ad   : > { %v1623_v43 = vpop.f32.mrf.mxu2 }
 0x1af   : > { %v1636_v48 = vpop.f32.mrf.mxu3  ;;  %v1599_v2 = vpop.f32.mrf.mxu0 }
 0x1b0   : > { %v1637_v26 = vadd.f32 %v1636_v48, %v1623_v43 }
 0x1b1   : > { %v1612_v9 = vpop.f32.mrf.mxu1 }
 0x1b2   : > { %v1703_v50 = vrot.slane %v1637_v26, 6 }
 0x1b4   : > { %v1709_v32 = vsel %vm1460_vm0, %v1611_v47, %v1703_v50 }
 0x1b5   : > { %v1625_v13 = vpop.f32.mrf.mxu2 }
 0x1b7   : > { %v1638_v17 = vpop.f32.mrf.mxu3 }
 0x1c7   : > { %v1649_v18 = vpop.f32.mrf.mxu0 }
 0x1c9   : > { %v1662_v22 = vpop.f32.mrf.mxu1 }
 0x1ca   : > { %v1663_v30 = vadd.f32 %v1662_v22, %v1649_v18 }
 0x1cc   : > { %v1704_v11 = vrot.slane %v1663_v30, 4 }
 0x1cd   : > { %v1675_v34 = vpop.f32.mrf.mxu2 }
 0x1cf   : > { %v1688_v35 = vpop.f32.mrf.mxu3  ;;  %v1651_v45 = vpop.f32.mrf.mxu0 }
 0x1d0   : > { %v1689_v37 = vadd.f32 %v1688_v35, %v1675_v34 }
 0x1d1   : > { %v1664_v55 = vpop.f32.mrf.mxu1 }
 0x1d2   : > { %v1705_v19 = vrot.slane %v1689_v37, 2 }
 0x1d4   : > { %v1710_v54 = vsel %vm1462_vm1, %v1704_v11, %v1705_v19  ;;  %1721 = sbr.rel (%p2700_p2) target bundleno = 673 (0x2a1), region = 60 }
 0x1d5   : > { %v1711_v51 = vsel %vm1464_vm2, %v1709_v32, %v1710_v54  ;;  %v1677_v57 = vpop.f32.mrf.mxu2 }
 0x1d6   : > { %v1715_v38 = vadd.f32 %v1711_v51, %v1476_v25 }
 0x1d7   : > { %v1690_v1 = vpop.f32.mrf.mxu3 }
 0x1d8   : > { %1717 = vst [vmem:[#allocation3] sm:$0xff] %v1715_v38 }
 0x1d9   : > { %v1722_v58 = vld [vmem:[#allocation10] sm:$0xff]  ;;  %v1723_v28 = vld [vmem:[#allocation2] sm:$0xff]  ;;  %vm1809_vm3 = vcmask 1040384   ;;  %vm1813_vm4 = vcmask 1042434  }
 0x1da   : > { %v1726_v59 = vperm.slane %v1722_v58, 0  ;;  %v1727_v63 = vperm.slane %v1722_v58, 1  ;;  %v1728_v4 = vperm.slane %v1722_v58, 2  ;;  %v1729_v8 = vperm.slane %v1722_v58, 3  ;;  %v1724_v52 = vld [vmem:[#allocation2 + $0x8] sm:$0xff] }
 0x1db   : > { %v1730_v6 = vperm.slane %v1722_v58, 4  ;;  %v1731_v39 = vperm.slane %v1722_v58, 5  ;;  %v1732_v46 = vperm.slane %v1722_v58, 6  ;;  %v1733_v7 = vperm.slane %v1722_v58, 7 }
 0x1dc   : > { %v1734_v10 = vrot.slane %v1727_v63, 6  ;;  %v1735_v15 = vrot.slane %v1728_v4, 4  ;;  %v1736_v24 = vrot.slane %v1729_v8, 2  ;;  %v1750_v8 = vld [vmem:[#allocation3 + $0x8] sm:$0xff] }
 0x1dd   : > { %v1737_v29 = vrot.slane %v1731_v39, 6  ;;  %v1738_v36 = vrot.slane %v1732_v46, 4  ;;  %v1739_v44 = vrot.slane %v1733_v7, 2 }
 0x1de   : > { %v1740_v53 = vsel %vm1460_vm0, %v1726_v59, %v1734_v10  ;;  %v1741_v56 = vsel %vm1462_vm1, %v1735_v15, %v1736_v24 }
 0x1df   : > { %v1751_v60 = vld [vmem:[#allocation3] sm:$0xff]  ;;  %v4316_v61 = vsel %vm1464_vm2, %v1740_v53, %v1741_v56  ;;  %v1743_v62 = vsel %vm1460_vm0, %v1730_v6, %v1737_v29  ;;  %v1744_v3 = vsel %vm1462_vm1, %v1738_v36, %v1739_v44 }
 0x1e0   : > { %v1745_v20 = vsel %vm1464_vm2, %v1743_v62, %v1744_v3  ;;  %v4322_v21 = vadd.f32 %v4316_v61, %v1723_v28  ;;  %v1752_v46 = vadd.f32 %v1750_v8, %v4316_v61 }
 0x1e1   : > { %v1749_v23 = vadd.f32 %v1745_v20, %v1724_v52  ;;  %v1753_v27 = vadd.f32 %v1751_v60, %v1745_v20 }
 0x1e2   : > { %1793 = vst [vmem:[#allocation1] ss:$4 sm:$0xff] %v4322_v21  ;;  %v1900_v10 = vsub.f32 %v1752_v46, %v4322_v21 }
 0x1e3   : > { %v1757_v5 = vand.u32 2147483647, %v1749_v23  ;;  %v1776_v14 = vand.u32 2147483647, %v1753_v27  ;;  %v1754_v25 = vmax.f32 %v1749_v23, 0.0  ;;  %v1773_v38 = vmax.f32 %v1753_v27, 0.0 }
 0x1e4   : > { %vm1755_vm7 = vcmp.ne.f32.partialorder %v1749_v23, %v1749_v23  ;;  %vm1774_vm8 = vcmp.ne.f32.partialorder %v1753_v27, %v1753_v27 }
 0x1e5   : > { %v1758_v16 = vsub.f32 0.0, %v1757_v5  ;;  %v1777_v49 = vsub.f32 0.0, %v1776_v14 }
 0x1e7   : > { %v1759_v40 = vmul.f32 1.442695, %v1758_v16  ;;  %v1778_v33 = vmul.f32 1.442695, %v1777_v49 }
 0x1e9   : > { %2958 = vpow2.f32 %v1759_v40  ;;  %v1794_v41 = vld.sshfl [vmem:[#allocation1] sm:$0xff pattern:$0x73625140]  ;;  %v1795_v12 = vld.sshfl [vmem:[#allocation1 + $0x8] sm:$0xff pattern:$0x73625140] }
 0x1ea   : > { %2960 = vpow2.f32 %v1778_v33  ;;  %v1796_v42 = vld.sshfl [vmem:[#allocation1 + $0x10] sm:$0xff pattern:$0x73625140]  ;;  %v1797_v31 = vld.sshfl [vmem:[#allocation1 + $0x18] sm:$0xff pattern:$0x73625140]  ;;  %v1802_v0 = vpack.c.bf16 %v1795_v12, %v1794_v41 }
 0x1eb   : > { %v1803_v43 = vpack.c.bf16 %v1797_v31, %v1796_v42 }
 0x1ec   : > { %v1806_v48 = vrot.slane %v1802_v0, 3 }
 0x1ed   : > { %v1807_v2 = vrot.slane %v1803_v43, 6  ;;  %v1808_v9 = vrot.slane %v1803_v43, 1 }
 0x1ee   : > { %v1812_v13 = vsel %vm1809_vm3, %v1802_v0, %v1806_v48 }
 0x1ef   : > { %v2959_v17 = vpop.eup %2958  ;;  %v1816_v18 = vsel %vm1813_vm4, %v1807_v2, %v1808_v9 }
 0x1f0   : > { %v2961_v22 = vpop.eup %2960  ;;  %v1761_v26 = vadd.f32 1.0, %v2959_v17  ;;  %v1764_v30 = vmul.f32 -0.5, %v2959_v17  ;;  %v1817_v34 = vsel %vm1460_vm0, %v1812_v13, %v1816_v18  ;;  %v1767_v50 = vand.u32 2147483647, %v2959_v17 }
 0x1f1   : > { %v1780_v35 = vadd.f32 1.0, %v2961_v22  ;;  %v1783_v45 = vmul.f32 -0.5, %v2961_v22  ;;  %1819 = vst [vmem:[#allocation12] sm:$0xf] %v1817_v34  ;;  %v1786_v37 = vand.u32 2147483647, %v2961_v22 }
 0x1f2   : > { %2962 = vlog2.f32 %v1761_v26  ;;  %v1765_v47 = vadd.f32 1.0, %v1764_v30  ;;  %vm1768_vm5 = vcmp.lt.f32.partialorder %v1767_v50, 0.0004427343 }
 0x1f3   : > { %2964 = vlog2.f32 %v1780_v35  ;;  %v1784_v11 = vadd.f32 1.0, %v1783_v45  ;;  %vm1787_vm6 = vcmp.lt.f32.partialorder %v1786_v37, 0.0004427343 }
 0x1f4   : > { %v1766_v55 = vmul.f32 %v2959_v17, %v1765_v47 }
 0x1f5   : > { %v1785_v32 = vmul.f32 %v2961_v22, %v1784_v11 }
 0x1f8   : > { %v2963_v19 = vpop.eup %2962 }
 0x1f9   : > { %v2965_v54 = vpop.eup %2964  ;;  %v1763_v51 = vmul.f32 0.6931472, %v2963_v19 }
 0x1fa   : > { %v1782_v57 = vmul.f32 0.6931472, %v2965_v54 }
 0x1fb   : > { %v1769_v1 = vsel %vm1768_vm5, %v1766_v55, %v1763_v51 }
 0x1fc   : > { %v1770_v58 = vadd.f32 %v1769_v1, %v1754_v25  ;;  %v1788_v59 = vsel %vm1787_vm6, %v1785_v32, %v1782_v57 }
 0x1fd   : > { %v1789_v63 = vadd.f32 %v1788_v59, %v1773_v38 }
 0x1fe   : > { %v1771_v4 = vsel %vm1755_vm7, %v1749_v23, %v1770_v58 }
 0x1ff   : > { %v1772_v6 = vadd.f32 0.0001, %v1771_v4  ;;  %v1790_v39 = vsel %vm1774_vm8, %v1753_v27, %v1789_v63 }
 0x200   : > { %v1791_v7 = vadd.f32 0.0001, %v1790_v39 }
 0x201   : > { %1821 = vst [vmem:[#allocation1] ss:$4 sm:$0xff] %v1772_v6  ;;  %2966 = vrcp.f32 %v1772_v6 }
 0x207   : > { %v2967_v15 = vpop.eup %2966 }
 0x208   : > { %v1822_v24 = vld.sshfl [vmem:[#allocation1] sm:$0xff pattern:$0x73625140]  ;;  %v1823_v28 = vld.sshfl [vmem:[#allocation1 + $0x8] sm:$0xff pattern:$0x73625140]  ;;  %v1899_v29 = vmul.f32 %v2967_v15, %v1791_v7  ;;  %v1901_v36 = vmul.f32 %v2967_v15, %v1900_v10 }
 0x209   : > { %v1824_v44 = vld.sshfl [vmem:[#allocation1 + $0x10] sm:$0xff pattern:$0x73625140]  ;;  %v1825_v52 = vld.sshfl [vmem:[#allocation1 + $0x18] sm:$0xff pattern:$0x73625140]  ;;  %v1830_v53 = vpack.c.bf16 %v1823_v28, %v1822_v24 }
 0x20a   : > { %v1831_v56 = vpack.c.bf16 %v1825_v52, %v1824_v44  ;;  %1847 = vst [vmem:[#allocation1] ss:$4 sm:$0xff] %v1752_v46  ;;  %v1902_v60 = vmul.f32 %v1899_v29, %v1899_v29  ;;  %v1903_v62 = vmul.f32 %v1901_v36, %v1901_v36  ;;  %2968 = vlog2.f32 %v1899_v29 }
 0x20b   : > { %v1834_v3 = vrot.slane %v1830_v53, 3 }
 0x20c   : > { %v1835_v20 = vrot.slane %v1831_v56, 6  ;;  %v1836_v23 = vrot.slane %v1831_v56, 1  ;;  %v1904_v61 = vadd.f32 %v1903_v62, %v1902_v60 }
 0x20d   : > { %v1839_v27 = vsel %vm1809_vm3, %v1830_v53, %v1834_v3 }
 0x20e   : > { %v1842_v21 = vsel %vm1813_vm4, %v1835_v20, %v1836_v23  ;;  %v2701_v14 = vadd.f32 -1.0, %v1904_v61 }
 0x20f   : > { %v1843_v5 = vsel %vm1460_vm0, %v1839_v27, %v1842_v21 }
 0x210   : > { %1845 = vst [vmem:[#allocation13] sm:$0xf] %v1843_v5  ;;  %v2969_v16 = vpop.eup %2968  ;;  %v1906_v0 = vmul.f32 0.5, %v2701_v14 }
 0x211   : > { %v1848_v49 = vld.sshfl [vmem:[#allocation1] sm:$0xff pattern:$0x73625140]  ;;  %v1849_v40 = vld.sshfl [vmem:[#allocation1 + $0x8] sm:$0xff pattern:$0x73625140] }
 0x212   : > { %v1850_v33 = vld.sshfl [vmem:[#allocation1 + $0x10] sm:$0xff pattern:$0x73625140]  ;;  %v1851_v41 = vld.sshfl [vmem:[#allocation1 + $0x18] sm:$0xff pattern:$0x73625140]  ;;  %v1856_v12 = vpack.c.bf16 %v1849_v40, %v1848_v49 }
 0x213   : > { %v1857_v42 = vpack.c.bf16 %v1851_v41, %v1850_v33  ;;  %1873 = vst [vmem:[#allocation1] ss:$4 sm:$0xff] %v1791_v7  ;;  %v1908_v43 = vmul.f32 0.6931472, %v2969_v16 }
 0x214   : > { %v1860_v31 = vrot.slane %v1856_v12, 3 }
 0x215   : > { %v1861_v48 = vrot.slane %v1857_v42, 6  ;;  %v1862_v2 = vrot.slane %v1857_v42, 1  ;;  %v1909_v18 = vsub.f32 %v1906_v0, %v1908_v43 }
 0x216   : > { %v1865_v9 = vsel %vm1809_vm3, %v1856_v12, %v1860_v31 }
 0x217   : > { %v1868_v13 = vsel %vm1813_vm4, %v1861_v48, %v1862_v2 }
 0x218   : > { %v1869_v17 = vsel %vm1460_vm0, %v1865_v9, %v1868_v13 }
 0x219   : > { %1871 = vst [vmem:[#allocation15] sm:$0xf] %v1869_v17 }
 0x21a   : > { %v1874_v22 = vld.sshfl [vmem:[#allocation1] sm:$0xff pattern:$0x73625140]  ;;  %v1875_v26 = vld.sshfl [vmem:[#allocation1 + $0x8] sm:$0xff pattern:$0x73625140] }
 0x21b   : > { %v1876_v30 = vld.sshfl [vmem:[#allocation1 + $0x10] sm:$0xff pattern:$0x73625140]  ;;  %v1877_v34 = vld.sshfl [vmem:[#allocation1 + $0x18] sm:$0xff pattern:$0x73625140]  ;;  %v1882_v35 = vpack.c.bf16 %v1875_v26, %v1874_v22 }
 0x21c   : > { %v1883_v45 = vpack.c.bf16 %v1877_v34, %v1876_v30  ;;  %1911 = vst [vmem:[#allocation1] ss:$4 sm:$0xff] %v1909_v18 }
 0x21d   : > { %v1886_v47 = vrot.slane %v1882_v35, 3 }
 0x21e   : > { %v1887_v50 = vrot.slane %v1883_v45, 6  ;;  %v1888_v11 = vrot.slane %v1883_v45, 1 }
 0x21f   : > { %v1891_v37 = vsel %vm1809_vm3, %v1882_v35, %v1886_v47 }
 0x220   : > { %v1894_v55 = vsel %vm1813_vm4, %v1887_v50, %v1888_v11 }
 0x221   : > { %v1895_v19 = vsel %vm1460_vm0, %v1891_v37, %v1894_v55 }
 0x222   : > { %1897 = vst [vmem:[#allocation16] sm:$0xf] %v1895_v19 }
 0x223   : > { %v1912_v25 = vld.sshfl [vmem:[#allocation1] sm:$0xff pattern:$0x73625140]  ;;  %v1913_v32 = vld.sshfl [vmem:[#allocation1 + $0x8] sm:$0xff pattern:$0x73625140] }
 0x224   : > { %v1914_v54 = vld.sshfl [vmem:[#allocation1 + $0x10] sm:$0xff pattern:$0x73625140]  ;;  %v1915_v51 = vld.sshfl [vmem:[#allocation1 + $0x18] sm:$0xff pattern:$0x73625140] }
 0x225   : > { %v1920_v38 = vsel %vm1460_vm0, %v1912_v25, 0.0  ;;  %v1921_v57 = vsel %vm1460_vm0, %v1913_v32, 0.0  ;;  %v1923_v1 = vsel %vm1460_vm0, %v1914_v54, 0.0  ;;  %v1925_v59 = vsel %vm1460_vm0, %v1915_v51, 0.0 }
 0x226   : > { %v1922_v58 = vadd.f32 %v1921_v57, %v1920_v38 }
 0x228   : > { %v1924_v63 = vadd.f32 %v1923_v1, %v1922_v58 }
 0x22a   : > { %v1926_v4 = vadd.f32 %v1925_v59, %v1924_v63 }
 0x22c   : > { %1927 = vadd.xlane.f32.xlu0 %v1926_v4 }
 0x29f   : > { %v1928_v8 = vpop.xlane.xlu0 %1927 }
 0x2a0   : > { %1929 = vst [vmem:[#allocation18] sm:$0x3] %v1928_v8 }
 0x2a1 PF: > { %p2891_p3 = scmp.eq.s32.totalorder %s3425_s20, 1  ;;  %s3306_s30 = smov [#allocation13]  }
 0x2a2   : > { %s1952_s11 = sshll.u32 %s3306_s30, 4  ;;  %s1954_s13 = sshll.u32 %s4404_s5, 4  ;;  %s1953_s11 = int_to_ptr.vmem [resolvable:$true] %s1952_s11  ;;  %s1955_s13 = int_to_ptr.hbm [resolvable:$true] %s1954_s13 }
 0x2a3   : > { %2857 = dma.vmem_to_hbm [thread:$0]  (%p2891_p3), %s1953_s11, 64, %s1955_s13, [#allocation14]  }
 0x2a4   : > { %s1982_s24 = sshll.u32 %s4406_s7, 4  ;;  %s3307_s25 = smov [#allocation16]   ;;  %s1983_s24 = int_to_ptr.hbm [resolvable:$true] %s1982_s24 }
 0x2a5   : > { %s1980_s22 = sshll.u32 %s3307_s25, 4  ;;  %s1940_s26 = sshll.u32 %s4403_s4, 4  ;;  %s1981_s22 = int_to_ptr.vmem [resolvable:$true] %s1980_s22  ;;  %s1941_s26 = int_to_ptr.hbm [resolvable:$true] %s1940_s26 }
 0x2a6   : > { %2861 = dma.vmem_to_hbm [thread:$0]  (%p2891_p3), %s1981_s22, 64, %s1983_s24, [#allocation17]  }
 0x2a7   : > { %s3308_s12 = smov [#allocation12]   ;;  %s3309_s14 = smov [#allocation15]  }
 0x2a8   : > { %s1938_s15 = sshll.u32 %s3308_s12, 4  ;;  %s1966_s16 = sshll.u32 %s3309_s14, 4  ;;  %s1939_s15 = int_to_ptr.vmem [resolvable:$true] %s1938_s15  ;;  %s1967_s16 = int_to_ptr.vmem [resolvable:$true] %s1966_s16 }
 0x2a9   : > { %2855 = dma.vmem_to_hbm [thread:$0]  (%p2891_p3), %s1939_s15, 64, %s1941_s26, [#allocation6]  }
 0x2aa   : > { %s4655_s8 = sld [smem:[#allocation108_spill]]  ;;  %s3310_s17 = smov [#allocation18]  }
 0x2ab   : > { %s4656_s30 = sld [smem:[#allocation109_spill]]  ;;  %s1994_s18 = sshll.u32 %s3310_s17, 4  ;;  %s1995_s18 = int_to_ptr.vmem [resolvable:$true] %s1994_s18 }
 0x2b0   : > { %s1968_s6 = sshll.u32 %s4655_s8, 4  ;;  %s1969_s6 = int_to_ptr.hbm [resolvable:$true] %s1968_s6 }
 0x2b1   : > { %2859 = dma.vmem_to_hbm [thread:$0]  (%p2891_p3), %s1967_s16, 64, %s1969_s6, [#allocation14]  }
 0x2b2   : > { %s1996_s11 = sshll.u32 %s4656_s30, 4  ;;  %s1997_s11 = int_to_ptr.hbm [resolvable:$true] %s1996_s11 }
 0x2b3   : > { %2863 = dma.vmem_to_hbm [thread:$0]  (%p2891_p3), %s1995_s18, 32, %s1997_s11, [#allocation17]  }
 0x2b4   : > { %3267 = dma.done.wait (%p2891_p3), [#allocation6], 64  }
 0x2b5   : > { %3269 = vsyncadd (%p2891_p3), [#allocation6], 4294967232 }
 0x2b6   : > { %3271 = dma.done.wait (%p2891_p3), [#allocation14], 128  }
 0x2b7   : > { %3273 = vsyncadd (%p2891_p3), [#allocation14], 4294967168 }
 0x2b8   : > { %3275 = dma.done.wait (%p2891_p3), [#allocation17], 96  }
 0x2b9   : > { %3277 = vsyncadd (%p2891_p3), [#allocation17], 4294967200 }
 0x2ba PF: > { %s4657_s13 = sld [smem:[#allocation26_spill]]  ;;  %s4661_s27 = smov %s3284_s28 }
 0x2bb   : > { %s4658_s19 = sld [smem:[#allocation25_spill]]  ;;  %s4663_s30 = smov %s3296_s9 }
 0x2bc   : > { %s4659_s29 = sld [smem:[#allocation28_spill]] }
 0x2bd   : > { %s4660_s21 = sld [smem:[#allocation27_spill]] }
 0x2c0   : > { %s29_s10 = sadd.s32 1, %s4657_s13  }
 0x2c1   : > { %p26_p4 = scmp.ge.s32.totalorder %s29_s10, 4   ;;  %s4662_s28 = smov %s4658_s19 }
 0x2c3   : > { %s4664_s9 = smov %s4660_s21  ;;  %28 = sbr.rel (!%p26_p4) target bundleno = 15 (0xf), region = 147 }
 0x2c8   :  { %2030 = vsyncpa [#allocation5], 1 }
 0x2c9   :  { %2032 = vsyncpa [#allocation5 + $0x1], 1 }
 0x2ca   :  { %2033 = vsyncpa [#allocation8], 1 }
 0x2cb   :  { %2035 = vsyncpa [#allocation8 + $0x1], 1 }
 0x2cc   :  { %2036 = vsyncpa [#allocation11], 1 }
 0x2cd   :  { %2037 = vsyncpa [#allocation6], 1 }
 0x2ce   :  { %2039 = vsyncpa [#allocation6 + $0x1], 1 }
 0x2cf   :  { %2040 = vsyncpa [#allocation14], 1 }
 0x2d0   :  { %2041 = vsyncpa [#allocation17], 1 }

</bundles_post_ra>
